<compile_context>
chip_gen: v7x
topology: tpu7x:2x2x1
jax: 0.10.0
libtpu: 0.0.40
codegen_flags: <defaults>
</compile_context>

<pallas_src>
import functools
import math

import jax
import jax.numpy as jnp
from jax.experimental import pallas as pl
from jax.experimental.pallas import tpu as pltpu

_LN_EPS = 1e-5  # nn.LayerNorm default


# ----------------------------- tiling helpers ---------------------------------

def _tile(dim, target, quantum):
    """Largest tile <= target that divides dim and is a multiple of `quantum`,
    falling back to the full dimension (full-extent blocks have no (8,128)
    divisibility constraint)."""
    if dim <= target:
        return dim
    t = (target // quantum) * quantum
    while t >= quantum:
        if dim % t == 0:
            return t
        t -= quantum
    return dim


def _heads_per_step(n_head, max_g=8):
    for g in range(min(n_head, max_g), 0, -1):
        if n_head % g == 0:
            return g
    return 1


# ----------------------------- Pallas kernels ---------------------------------

def _matmul_kernel(x_ref, w_ref, b_ref, *rest, has_residual):
    """Tiled y = x @ w + b [+ residual]; K-axis accumulation in a f32 VMEM scratch."""
    if has_residual:
        r_ref, o_ref, acc_ref = rest
    else:
        o_ref, acc_ref = rest
    k = pl.program_id(2)

    @pl.when(k == 0)
    def _():
        acc_ref[...] = jnp.zeros_like(acc_ref)

    acc_ref[...] += jnp.dot(x_ref[...], w_ref[...],
                            preferred_element_type=jnp.float32)

    @pl.when(k == pl.num_programs(2) - 1)
    def _():
        y = acc_ref[...] + b_ref[...]
        if has_residual:
            y = y + r_ref[...]
        o_ref[...] = y.astype(o_ref.dtype)


def matmul(x, w, b, residual=None, out_dtype=jnp.float32,
           tm=256, tn=512, tk=512):
    """x:(M,K) bf16, w:(K,N) bf16, b:(N,) f32 [, residual:(M,N) f32] -> (M,N)."""
    M, K = x.shape
    K2, N = w.shape
    assert K == K2
    tm = _tile(M, tm, 8)
    tn = _tile(N, tn, 128)    # 512-target keeps tiles 256-multiples for v6e's MXU
    tk = _tile(K, tk, 128)
    grid = (M // tm, N // tn, K // tk)

    in_specs = [
        pl.BlockSpec((tm, tk), lambda i, j, k: (i, k)),
        pl.BlockSpec((tk, tn), lambda i, j, k: (k, j)),
        pl.BlockSpec((1, tn), lambda i, j, k: (0, j)),
    ]
    args = [x, w, b.reshape(1, N).astype(jnp.float32)]
    if residual is not None:
        in_specs.append(pl.BlockSpec((tm, tn), lambda i, j, k: (i, j)))
        args.append(residual)

    return pl.pallas_call(
        functools.partial(_matmul_kernel, has_residual=residual is not None),
        out_shape=jax.ShapeDtypeStruct((M, N), out_dtype),
        grid=grid,
        in_specs=in_specs,
        out_specs=pl.BlockSpec((tm, tn), lambda i, j, k: (i, j)),
        scratch_shapes=[pltpu.VMEM((tm, tn), jnp.float32)],
        compiler_params=pltpu.CompilerParams(
            dimension_semantics=("parallel", "parallel", "arbitrary")),
    )(*args)


def _ln_matmul_kernel(x_ref, g_ref, beta_ref, w_ref, b_ref, o_ref):
    """y = LayerNorm(x) @ w + b.  LN stats in f32 (matches LayerNorm.forward upcast),
    matmul in bf16 with f32 accumulation.  K (= n_state) is kept untiled so each row
    is normalized over its full feature dim inside the kernel."""
    x = x_ref[...].astype(jnp.float32)
    mean = jnp.mean(x, axis=-1, keepdims=True)
    var = jnp.mean((x - mean) * (x - mean), axis=-1, keepdims=True)
    h = (x - mean) * jax.lax.rsqrt(var + _LN_EPS) * g_ref[...] + beta_ref[...]
    y = jnp.dot(h.astype(jnp.bfloat16), w_ref[...],
                preferred_element_type=jnp.float32)
    o_ref[...] = (y + b_ref[...]).astype(o_ref.dtype)


def ln_matmul(x, gamma, beta, w, b, out_dtype=jnp.bfloat16, tm=256, tn=512):
    """x:(M,K) f32, gamma/beta:(K,), w:(K,N) bf16, b:(N,) -> (M,N)."""
    M, K = x.shape
    K2, N = w.shape
    assert K == K2
    tm = _tile(M, tm, 8)
    tn = _tile(N, tn, 128)
    grid = (M // tm, N // tn)

    return pl.pallas_call(
        _ln_matmul_kernel,
        out_shape=jax.ShapeDtypeStruct((M, N), out_dtype),
        grid=grid,
        in_specs=[
            pl.BlockSpec((tm, K), lambda i, j: (i, 0)),
            pl.BlockSpec((1, K), lambda i, j: (0, 0)),
            pl.BlockSpec((1, K), lambda i, j: (0, 0)),
            pl.BlockSpec((K, tn), lambda i, j: (0, j)),
            pl.BlockSpec((1, tn), lambda i, j: (0, j)),
        ],
        out_specs=pl.BlockSpec((tm, tn), lambda i, j: (i, j)),
        compiler_params=pltpu.CompilerParams(
            dimension_semantics=("parallel", "parallel")),
    )(x, gamma.reshape(1, K).astype(jnp.float32),
      beta.reshape(1, K).astype(jnp.float32), w,
      b.reshape(1, N).astype(jnp.float32))


def _ln_logits_kernel(x_ref, g_ref, beta_ref, e_ref, o_ref):
    """logits = LayerNorm(x) @ emb.T without materializing emb.T: contract the last
    dim of the normalized activations against the last dim of the (V, D) tile."""
    x = x_ref[...].astype(jnp.float32)
    mean = jnp.mean(x, axis=-1, keepdims=True)
    var = jnp.mean((x - mean) * (x - mean), axis=-1, keepdims=True)
    h = (x - mean) * jax.lax.rsqrt(var + _LN_EPS) * g_ref[...] + beta_ref[...]
    o_ref[...] = jax.lax.dot_general(
        h.astype(jnp.bfloat16), e_ref[...],
        (((1,), (1,)), ((), ())), preferred_element_type=jnp.float32)


def ln_logits(x, gamma, beta, emb_bf16, tm=256, tv=512):
    """x:(M,D) f32, emb:(V,D) bf16 -> logits (M,V) f32 (tied weights, no bias)."""
    M, D = x.shape
    V, D2 = emb_bf16.shape
    assert D == D2
    tm = _tile(M, tm, 8)
    tv = _tile(V, tv, 128)
    grid = (M // tm, V // tv)

    return pl.pallas_call(
        _ln_logits_kernel,
        out_shape=jax.ShapeDtypeStruct((M, V), jnp.float32),
        grid=grid,
        in_specs=[
            pl.BlockSpec((tm, D), lambda i, j: (i, 0)),
            pl.BlockSpec((1, D), lambda i, j: (0, 0)),
            pl.BlockSpec((1, D), lambda i, j: (0, 0)),
            pl.BlockSpec((tv, D), lambda i, j: (j, 0)),
        ],
        out_specs=pl.BlockSpec((tm, tv), lambda i, j: (i, j)),
        compiler_params=pltpu.CompilerParams(
            dimension_semantics=("parallel", "parallel")),
    )(x, gamma.reshape(1, D).astype(jnp.float32),
      beta.reshape(1, D).astype(jnp.float32), emb_bf16)


def _attention_kernel(q_ref, k_ref, v_ref, o_ref, *, scale, causal):
    """G heads per grid step.  qk / softmax in f32; the reference's dual Dh^-0.25
    scaling of q and k is folded into a single qk * Dh^-0.5 multiply.  The causal
    mask is generated in-kernel (no -inf matrix streamed from HBM); cross-attention
    skips masking entirely."""
    q = q_ref[0]          # (G, T, Dh) bf16
    k = k_ref[0]          # (G, S, Dh) bf16
    v = v_ref[0]          # (G, S, Dh) bf16
    qk = jnp.einsum("gqd,gkd->gqk", q, k,
                    preferred_element_type=jnp.float32) * scale
    if causal:
        row = jax.lax.broadcasted_iota(jnp.int32, qk.shape, 1)
        col = jax.lax.broadcasted_iota(jnp.int32, qk.shape, 2)
        qk = jnp.where(col > row, -jnp.inf, qk)
    m = jnp.max(qk, axis=-1, keepdims=True)
    e = jnp.exp(qk - m)
    w = e * pl.reciprocal(jnp.sum(e, axis=-1, keepdims=True), approx=True)
    wv = jnp.einsum("gqk,gkd->gqd", w.astype(v.dtype), v,
                    preferred_element_type=jnp.float32)
    o_ref[0] = wv.astype(o_ref.dtype)


def mha_attention(q, k, v, n_head, causal):
    """q:(B,T,D) bf16, k/v:(B,S,D) bf16 -> (B*T, D) bf16."""
    B, T, D = q.shape
    S = k.shape[1]
    Dh = D // n_head
    G = _heads_per_step(n_head)
    scale = 1.0 / math.sqrt(Dh)       # == (Dh ** -0.25) ** 2

    def split_heads(t, L):
        return t.reshape(B, L, n_head, Dh).transpose(0, 2, 1, 3)

    qh, kh, vh = split_heads(q, T), split_heads(k, S), split_heads(v, S)

    out = pl.pallas_call(
        functools.partial(_attention_kernel, scale=scale, causal=causal),
        out_shape=jax.ShapeDtypeStruct((B, n_head, T, Dh), jnp.bfloat16),
        grid=(B, n_head // G),
        in_specs=[
            pl.BlockSpec((1, G, T, Dh), lambda b, g: (b, g, 0, 0)),
            pl.BlockSpec((1, G, S, Dh), lambda b, g: (b, g, 0, 0)),
            pl.BlockSpec((1, G, S, Dh), lambda b, g: (b, g, 0, 0)),
        ],
        out_specs=pl.BlockSpec((1, G, T, Dh), lambda b, g: (b, g, 0, 0)),
        compiler_params=pltpu.CompilerParams(
            dimension_semantics=("parallel", "parallel")),
    )(qh, kh, vh)

    return out.transpose(0, 2, 1, 3).reshape(B * T, D)


# ----------------------------- model (glue in JAX) ----------------------------

def _residual_block(p, x2d, xa2d_bf16, B, T, Ta, n_head):
    D = x2d.shape[1]

    # ---- masked self-attention: fused LN + QKV projection ----
    qkv = ln_matmul(x2d, p["attn_ln_g"], p["attn_ln_b"],
                    p["attn_w_qkv"], p["attn_b_qkv"], out_dtype=jnp.bfloat16)
    q = qkv[:, :D].reshape(B, T, D)
    k = qkv[:, D:2 * D].reshape(B, T, D)
    v = qkv[:, 2 * D:].reshape(B, T, D)
    wv = mha_attention(q, k, v, n_head, causal=True)
    x2d = matmul(wv, p["attn_wo"], p["attn_bo"], residual=x2d)   # residual fused

    # ---- cross-attention over audio features ----
    q = ln_matmul(x2d, p["xattn_ln_g"], p["xattn_ln_b"],
                  p["xattn_wq"], p["xattn_bq"], out_dtype=jnp.bfloat16)
    q = q.reshape(B, T, D)
    kv = matmul(xa2d_bf16, p["xattn_w_kv"], p["xattn_b_kv"],
                out_dtype=jnp.bfloat16)                          # fused K|V over xa
    k = kv[:, :D].reshape(B, Ta, D)
    v = kv[:, D:].reshape(B, Ta, D)
    wv = mha_attention(q, k, v, n_head, causal=False)
    x2d = matmul(wv, p["xattn_wo"], p["xattn_bo"], residual=x2d)

    # ---- MLP: fused LN + w1(+bias); exact-erf GELU; w2(+bias+residual) ----
    h1 = ln_matmul(x2d, p["mlp_ln_g"], p["mlp_ln_b"],
                   p["mlp_w1"], p["mlp_b1"], out_dtype=jnp.float32)
    # TODO(synk): exact-erf GELU kept in plain JAX between the two fused Pallas
    # matmuls (lax.erf lowering in Mosaic not verified); matches nn.GELU() exactly.
    h1 = jax.nn.gelu(h1, approximate=False).astype(jnp.bfloat16)
    x2d = matmul(h1, p["mlp_w2"], p["mlp_b2"], residual=x2d)
    return x2d


def text_decoder_forward(params, tokens, xa, n_head, offset=0):
    """tokens: (B, T) int32; xa: (B, Ta, D) float32 -> logits (B, T, n_vocab) f32."""
    B, T = tokens.shape
    emb = params["token_embedding"]            # (V, D) f32
    V, D = emb.shape
    Ta = xa.shape[1]

    # token embedding + positional slice (glue: gather + add)
    pos = jax.lax.dynamic_slice_in_dim(params["positional_embedding"], offset, T, axis=0)
    x = (emb[tokens] + pos).astype(xa.dtype)
    x2d = x.reshape(B * T, D)
    xa2d_bf16 = xa.reshape(B * Ta, D).astype(jnp.bfloat16)

    # TODO(synk): kv_cache write/read path of MultiHeadAttention is not exercised
    #             (kv_cache=None here), so it is not implemented.
    for blk in params["blocks"]:
        x2d = _residual_block(blk, x2d, xa2d_bf16, B, T, Ta, n_head)

    # final LN fused into the tied-weight logits projection (no emb.T, no bias)
    logits = ln_logits(x2d, params["ln_g"], params["ln_b"],
                       params["token_embedding_bf16"])
    return logits.reshape(B, T, V)


# ----------------------------- deterministic init -----------------------------

def init_params(key, n_vocab, n_ctx, n_state, n_head, n_layer):
    n_mlp = 4 * n_state
    keys = jax.random.split(key, 2 + n_layer)

    def dense(k, din, dout):
        return jax.random.normal(k, (din, dout), jnp.float32) * 0.02

    def vec(k, d):
        return jax.random.normal(k, (d,), jnp.float32) * 0.02

    emb = jax.random.normal(keys[0], (n_vocab, n_state), jnp.float32) * 0.02
    params = {
        "token_embedding": emb,
        "token_embedding_bf16": emb.astype(jnp.bfloat16),
        "positional_embedding":
            jax.random.normal(keys[1], (n_ctx, n_state), jnp.float32) * 0.02,
        "ln_g": jnp.ones((n_state,), jnp.float32),
        "ln_b": jnp.zeros((n_state,), jnp.float32),
        "blocks": [],
    }
    zeros_d = jnp.zeros((n_state,), jnp.float32)
    for l in range(n_layer):
        ks = jax.random.split(keys[2 + l], 20)
        wq, bq = dense(ks[0], n_state, n_state), vec(ks[1], n_state)
        wk = dense(ks[2], n_state, n_state)                      # key has no bias
        wv_, bv = dense(ks[3], n_state, n_state), vec(ks[4], n_state)
        xwq, xbq = dense(ks[7], n_state, n_state), vec(ks[8], n_state)
        xwk = dense(ks[9], n_state, n_state)                     # key has no bias
        xwv, xbv = dense(ks[10], n_state, n_state), vec(ks[11], n_state)
        blk = {
            # self-attention (fused QKV; zero bias segment stands in for bias-less key)
            "attn_w_qkv": jnp.concatenate([wq, wk, wv_], axis=1).astype(jnp.bfloat16),
            "attn_b_qkv": jnp.concatenate([bq, zeros_d, bv]),
            "attn_wo": dense(ks[5], n_state, n_state).astype(jnp.bfloat16),
            "attn_bo": vec(ks[6], n_state),
            "attn_ln_g": jnp.ones((n_state,), jnp.float32),
            "attn_ln_b": jnp.zeros((n_state,), jnp.float32),
            # cross-attention (Q from x, fused K|V from xa)
            "xattn_wq": xwq.astype(jnp.bfloat16), "xattn_bq": xbq,
            "xattn_w_kv": jnp.concatenate([xwk, xwv], axis=1).astype(jnp.bfloat16),
            "xattn_b_kv": jnp.concatenate([zeros_d, xbv]),
            "xattn_wo": dense(ks[12], n_state, n_state).astype(jnp.bfloat16),
            "xattn_bo": vec(ks[13], n_state),
            "xattn_ln_g": jnp.ones((n_state,), jnp.float32),
            "xattn_ln_b": jnp.zeros((n_state,), jnp.float32),
            # MLP
            "mlp_w1": dense(ks[14], n_state, n_mlp).astype(jnp.bfloat16),
            "mlp_b1": vec(ks[15], n_mlp),
            "mlp_w2": dense(ks[16], n_mlp, n_state).astype(jnp.bfloat16),
            "mlp_b2": vec(ks[17], n_state),
            "mlp_ln_g": jnp.ones((n_state,), jnp.float32),
            "mlp_ln_b": jnp.zeros((n_state,), jnp.float32),
        }
        params["blocks"].append(blk)
    return params


# ------------------------------------ main -------------------------------------

if __name__ == "__main__":
    # small config consistent with the module
    n_vocab, n_ctx, n_state, n_head, n_layer = 128, 16, 32, 4, 2
    batch, seq, n_audio_ctx = 2, 8, 16

    root = jax.random.PRNGKey(0)
    k_params, k_tok, k_xa = jax.random.split(root, 3)

    params = init_params(k_params, n_vocab, n_ctx, n_state, n_head, n_layer)
    tokens = jax.random.randint(k_tok, (batch, seq), 0, n_vocab, dtype=jnp.int32)
    xa = jax.random.normal(k_xa, (batch, n_audio_ctx, n_state), jnp.float32)

    fwd = jax.jit(text_decoder_forward, static_argnames=("n_head", "offset"))
    logits = fwd(params, tokens, xa, n_head=n_head, offset=0)
    logits = jax.block_until_ready(logits)

    assert logits.shape == (batch, seq, n_vocab), logits.shape
    assert logits.dtype == jnp.float32
    assert bool(jnp.all(jnp.isfinite(logits)))
    print("KERNEL_OK")
</pallas_src>

<mosaic_0001>
module attributes {stable_mosaic.version = 11 : i64} {
  func.func @_ln_matmul_kernel(%arg0: i32, %arg1: i32, %arg2: memref<16x32xf32, #tpu.memory_space<vmem>>, %arg3: memref<1x32xf32, #tpu.memory_space<vmem>>, %arg4: memref<1x32xf32, #tpu.memory_space<vmem>>, %arg5: memref<32x96xbf16, #tpu.memory_space<vmem>>, %arg6: memref<1x96xf32, #tpu.memory_space<vmem>>, %arg7: memref<16x96xbf16, #tpu.memory_space<vmem>>) attributes {dimension_semantics = [#tpu.dimension_semantics<parallel>, #tpu.dimension_semantics<parallel>], iteration_bounds = array<i64: 1, 1>, scalar_prefetch = 0 : i64, scratch_operands = 0 : i64, tpu.core_type = #tpu.core_type<tc>, window_params = [{transform_indices = @transform_0, window_bounds = array<i64: 16, 32>}, {pipeline_mode = #tpu.pipeline_mode<synchronous>, transform_indices = @transform_1, window_bounds = array<i64: 1, 32>}, {pipeline_mode = #tpu.pipeline_mode<synchronous>, transform_indices = @transform_2, window_bounds = array<i64: 1, 32>}, {transform_indices = @transform_3, window_bounds = array<i64: 32, 96>}, {transform_indices = @transform_4, window_bounds = array<i64: 1, 96>}, {transform_indices = @transform_5, window_bounds = array<i64: 16, 96>}]} {
    %c0 = arith.constant 0 : index
    %c0_0 = arith.constant 0 : index
    %0 = vector.load %arg2[%c0, %c0_0] : memref<16x32xf32, #tpu.memory_space<vmem>>, vector<16x32xf32>
    %cst = arith.constant dense<0.000000e+00> : vector<16xf32>
    %1 = vector.multi_reduction <add>, %0, %cst [1] : vector<16x32xf32> to vector<16xf32>
    %2 = vector.shape_cast %1 : vector<16xf32> to vector<16x1xf32>
    %cst_1 = arith.constant 3.200000e+01 : f32
    %3 = vector.broadcast %cst_1 : f32 to vector<16x1xf32>
    %4 = arith.divf %2, %3 : vector<16x1xf32>
    %5 = vector.broadcast %4 : vector<16x1xf32> to vector<16x32xf32>
    %6 = arith.subf %0, %5 : vector<16x32xf32>
    %7 = vector.broadcast %4 : vector<16x1xf32> to vector<16x32xf32>
    %8 = arith.subf %0, %7 : vector<16x32xf32>
    %9 = arith.mulf %6, %8 : vector<16x32xf32>
    %cst_2 = arith.constant dense<0.000000e+00> : vector<16xf32>
    %10 = vector.multi_reduction <add>, %9, %cst_2 [1] : vector<16x32xf32> to vector<16xf32>
    %11 = vector.shape_cast %10 : vector<16xf32> to vector<16x1xf32>
    %cst_3 = arith.constant 3.200000e+01 : f32
    %12 = vector.broadcast %cst_3 : f32 to vector<16x1xf32>
    %13 = arith.divf %11, %12 : vector<16x1xf32>
    %14 = vector.broadcast %4 : vector<16x1xf32> to vector<16x32xf32>
    %15 = arith.subf %0, %14 : vector<16x32xf32>
    %cst_4 = arith.constant 9.99999974E-6 : f32
    %16 = vector.broadcast %cst_4 : f32 to vector<16x1xf32>
    %17 = arith.addf %13, %16 : vector<16x1xf32>
    %18 = math.rsqrt %17 : vector<16x1xf32>
    %19 = vector.broadcast %18 : vector<16x1xf32> to vector<16x32xf32>
    %20 = arith.mulf %15, %19 : vector<16x32xf32>
    %c0_5 = arith.constant 0 : index
    %c0_6 = arith.constant 0 : index
    %21 = vector.load %arg3[%c0_5, %c0_6] : memref<1x32xf32, #tpu.memory_space<vmem>>, vector<1x32xf32>
    %22 = vector.broadcast %21 : vector<1x32xf32> to vector<16x32xf32>
    %23 = arith.mulf %20, %22 : vector<16x32xf32>
    %c0_7 = arith.constant 0 : index
    %c0_8 = arith.constant 0 : index
    %24 = vector.load %arg4[%c0_7, %c0_8] : memref<1x32xf32, #tpu.memory_space<vmem>>, vector<1x32xf32>
    %25 = vector.broadcast %24 : vector<1x32xf32> to vector<16x32xf32>
    %26 = arith.addf %23, %25 : vector<16x32xf32>
    %27 = arith.truncf %26 : vector<16x32xf32> to vector<16x32xbf16>
    %c0_9 = arith.constant 0 : index
    %c0_10 = arith.constant 0 : index
    %28 = vector.load %arg5[%c0_9, %c0_10] : memref<32x96xbf16, #tpu.memory_space<vmem>>, vector<32x96xbf16>
    %cst_11 = arith.constant dense<0.000000e+00> : vector<16x96xf32>
    %29 = tpu.matmul %27, %28, %cst_11 {dimension_numbers = #tpu.dot_dimension_numbers<[1], [0], [0], [1], [0, 0, 1, 1], [], []>} : vector<16x32xbf16>, vector<32x96xbf16>, vector<16x96xf32> -> vector<16x96xf32>
    %c0_12 = arith.constant 0 : index
    %c0_13 = arith.constant 0 : index
    %30 = vector.load %arg6[%c0_12, %c0_13] : memref<1x96xf32, #tpu.memory_space<vmem>>, vector<1x96xf32>
    %31 = vector.broadcast %30 : vector<1x96xf32> to vector<16x96xf32>
    %32 = arith.addf %29, %31 : vector<16x96xf32>
    %33 = arith.truncf %32 : vector<16x96xf32> to vector<16x96xbf16>
    %c0_14 = arith.constant 0 : index
    %c0_15 = arith.constant 0 : index
    %34 = vector.load %arg7[%c0_14, %c0_15] : memref<16x96xbf16, #tpu.memory_space<vmem>>, vector<16x96xbf16>
    tpu.vector_store %arg7[%c0_14, %c0_15], %33 {strides = array<i32>} : memref<16x96xbf16, #tpu.memory_space<vmem>>, vector<16x96xbf16>,
    return
  }
  func.func @transform_0(%arg0: i32, %arg1: i32) -> (i32, i32) {
    %c0_i32 = arith.constant 0 : i32
    %c0_i32_0 = arith.constant 0 : i32
    return %arg0, %c0_i32 : i32, i32
  }
  func.func @transform_1(%arg0: i32, %arg1: i32) -> (i32, i32) {
    %c0_i32 = arith.constant 0 : i32
    %c0_i32_0 = arith.constant 0 : i32
    %c0_i32_1 = arith.constant 0 : i32
    return %c0_i32, %c0_i32_0 : i32, i32
  }
  func.func @transform_2(%arg0: i32, %arg1: i32) -> (i32, i32) {
    %c0_i32 = arith.constant 0 : i32
    %c0_i32_0 = arith.constant 0 : i32
    %c0_i32_1 = arith.constant 0 : i32
    return %c0_i32, %c0_i32_0 : i32, i32
  }
  func.func @transform_3(%arg0: i32, %arg1: i32) -> (i32, i32) {
    %c0_i32 = arith.constant 0 : i32
    %c0_i32_0 = arith.constant 0 : i32
    return %c0_i32, %arg1 : i32, i32
  }
  func.func @transform_4(%arg0: i32, %arg1: i32) -> (i32, i32) {
    %c0_i32 = arith.constant 0 : i32
    %c0_i32_0 = arith.constant 0 : i32
    return %c0_i32, %arg1 : i32, i32
  }
  func.func @transform_5(%arg0: i32, %arg1: i32) -> (i32, i32) {
    %c0_i32 = arith.constant 0 : i32
    return %arg0, %arg1 : i32, i32
  }
}

module attributes {stable_mosaic.version = 11 : i64} {
  func.func @_attention_kernel(%arg0: i32, %arg1: i32, %arg2: memref<1x4x8x8xbf16, #tpu.memory_space<vmem>>, %arg3: memref<1x4x8x8xbf16, #tpu.memory_space<vmem>>, %arg4: memref<1x4x8x8xbf16, #tpu.memory_space<vmem>>, %arg5: memref<1x4x8x8xbf16, #tpu.memory_space<vmem>>) attributes {dimension_semantics = [#tpu.dimension_semantics<parallel>, #tpu.dimension_semantics<parallel>], iteration_bounds = array<i64: 2, 1>, scalar_prefetch = 0 : i64, scratch_operands = 0 : i64, tpu.core_type = #tpu.core_type<tc>, window_params = [{transform_indices = @transform_0, window_bounds = array<i64: 1, 4, 8, 8>}, {transform_indices = @transform_1, window_bounds = array<i64: 1, 4, 8, 8>}, {transform_indices = @transform_2, window_bounds = array<i64: 1, 4, 8, 8>}, {transform_indices = @transform_3, window_bounds = array<i64: 1, 4, 8, 8>}]} {
    %c0 = arith.constant 0 : index
    %c0_0 = arith.constant 0 : index
    %c0_1 = arith.constant 0 : index
    %c0_2 = arith.constant 0 : index
    %0 = vector.load %arg2[%c0, %c0_0, %c0_1, %c0_2] : memref<1x4x8x8xbf16, #tpu.memory_space<vmem>>, vector<1x4x8x8xbf16>
    %1 = vector.shape_cast %0 : vector<1x4x8x8xbf16> to vector<4x8x8xbf16>
    %c0_3 = arith.constant 0 : index
    %c0_4 = arith.constant 0 : index
    %c0_5 = arith.constant 0 : index
    %c0_6 = arith.constant 0 : index
    %2 = vector.load %arg3[%c0_3, %c0_4, %c0_5, %c0_6] : memref<1x4x8x8xbf16, #tpu.memory_space<vmem>>, vector<1x4x8x8xbf16>
    %3 = vector.shape_cast %2 : vector<1x4x8x8xbf16> to vector<4x8x8xbf16>
    %c0_7 = arith.constant 0 : index
    %c0_8 = arith.constant 0 : index
    %c0_9 = arith.constant 0 : index
    %c0_10 = arith.constant 0 : index
    %4 = vector.load %arg4[%c0_7, %c0_8, %c0_9, %c0_10] : memref<1x4x8x8xbf16, #tpu.memory_space<vmem>>, vector<1x4x8x8xbf16>
    %5 = vector.shape_cast %4 : vector<1x4x8x8xbf16> to vector<4x8x8xbf16>
    "tpu.trace_start"() <{level = 10 : i32, message = "gqd,gkd->gqk"}> : () -> ()
    %cst = arith.constant dense<0.000000e+00> : vector<4x8x8xf32>
    %6 = tpu.matmul %1, %3, %cst {dimension_numbers = #tpu.dot_dimension_numbers<[2], [2], [1], [1], [0, 0, 0, 1, 1, 1], [0], [0]>} : vector<4x8x8xbf16>, vector<4x8x8xbf16>, vector<4x8x8xf32> -> vector<4x8x8xf32>
    "tpu.trace_stop"() : () -> ()
    %cst_11 = arith.constant 0.353553385 : f32
    %7 = vector.broadcast %cst_11 : f32 to vector<4x8x8xf32>
    %8 = arith.mulf %6, %7 : vector<4x8x8xf32>
    %9 = tpu.iota {dimensions = array<i32: 1>} : vector<4x8x8xi32>
    %10 = tpu.iota {dimensions = array<i32: 2>} : vector<4x8x8xi32>
    %11 = arith.cmpi sgt, %10, %9 : vector<4x8x8xi32>
    %cst_12 = arith.constant 0xFF800000 : f32
    %12 = vector.broadcast %cst_12 : f32 to vector<4x8x8xf32>
    %13 = arith.select %11, %12, %8 : vector<4x8x8xi1>, vector<4x8x8xf32>
    %cst_13 = arith.constant dense<0xFF800000> : vector<4x8xf32>
    %14 = vector.multi_reduction <maximumf>, %13, %cst_13 [2] : vector<4x8x8xf32> to vector<4x8xf32>
    %15 = vector.shape_cast %14 : vector<4x8xf32> to vector<4x8x1xf32>
    %16 = vector.broadcast %15 : vector<4x8x1xf32> to vector<4x8x8xf32>
    %17 = arith.subf %13, %16 : vector<4x8x8xf32>
    %18 = math.exp %17 : vector<4x8x8xf32>
    %cst_14 = arith.constant dense<0.000000e+00> : vector<4x8xf32>
    %19 = vector.multi_reduction <add>, %18, %cst_14 [2] : vector<4x8x8xf32> to vector<4x8xf32>
    %20 = vector.shape_cast %19 : vector<4x8xf32> to vector<4x8x1xf32>
    %21 = tpu.reciprocal %20 {approx = true} : vector<4x8x1xf32> -> vector<4x8x1xf32>
    %22 = vector.broadcast %21 : vector<4x8x1xf32> to vector<4x8x8xf32>
    %23 = arith.mulf %18, %22 : vector<4x8x8xf32>
    %24 = arith.truncf %23 : vector<4x8x8xf32> to vector<4x8x8xbf16>
    "tpu.trace_start"() <{level = 10 : i32, message = "gqk,gkd->gqd"}> : () -> ()
    %cst_15 = arith.constant dense<0.000000e+00> : vector<4x8x8xf32>
    %25 = tpu.matmul %24, %5, %cst_15 {dimension_numbers = #tpu.dot_dimension_numbers<[2], [1], [1], [2], [0, 0, 0, 1, 1, 2], [0], [0]>} : vector<4x8x8xbf16>, vector<4x8x8xbf16>, vector<4x8x8xf32> -> vector<4x8x8xf32>
    "tpu.trace_stop"() : () -> ()
    %26 = arith.truncf %25 : vector<4x8x8xf32> to vector<4x8x8xbf16>
    %c0_16 = arith.constant 0 : index
    %c0_17 = arith.constant 0 : index
    %c0_18 = arith.constant 0 : index
    %c0_19 = arith.constant 0 : index
    %27 = vector.load %arg5[%c0_16, %c0_17, %c0_18, %c0_19] : memref<1x4x8x8xbf16, #tpu.memory_space<vmem>>, vector<1x4x8x8xbf16>
    %28 = vector.shape_cast %27 : vector<1x4x8x8xbf16> to vector<4x8x8xbf16>
    %29 = vector.shape_cast %26 : vector<4x8x8xbf16> to vector<1x4x8x8xbf16>
    tpu.vector_store %arg5[%c0_16, %c0_17, %c0_18, %c0_19], %29 {strides = array<i32>} : memref<1x4x8x8xbf16, #tpu.memory_space<vmem>>, vector<1x4x8x8xbf16>,
    return
  }
  func.func @transform_0(%arg0: i32, %arg1: i32) -> (i32, i32, i32, i32) {
    %c0_i32 = arith.constant 0 : i32
    %c0_i32_0 = arith.constant 0 : i32
    %c0_i32_1 = arith.constant 0 : i32
    return %arg0, %arg1, %c0_i32, %c0_i32_0 : i32, i32, i32, i32
  }
  func.func @transform_1(%arg0: i32, %arg1: i32) -> (i32, i32, i32, i32) {
    %c0_i32 = arith.constant 0 : i32
    %c0_i32_0 = arith.constant 0 : i32
    %c0_i32_1 = arith.constant 0 : i32
    return %arg0, %arg1, %c0_i32, %c0_i32_0 : i32, i32, i32, i32
  }
  func.func @transform_2(%arg0: i32, %arg1: i32) -> (i32, i32, i32, i32) {
    %c0_i32 = arith.constant 0 : i32
    %c0_i32_0 = arith.constant 0 : i32
    %c0_i32_1 = arith.constant 0 : i32
    return %arg0, %arg1, %c0_i32, %c0_i32_0 : i32, i32, i32, i32
  }
  func.func @transform_3(%arg0: i32, %arg1: i32) -> (i32, i32, i32, i32) {
    %c0_i32 = arith.constant 0 : i32
    %c0_i32_0 = arith.constant 0 : i32
    %c0_i32_1 = arith.constant 0 : i32
    return %arg0, %arg1, %c0_i32, %c0_i32_0 : i32, i32, i32, i32
  }
}

module attributes {stable_mosaic.version = 11 : i64} {
  func.func @_matmul_kernel(%arg0: i32, %arg1: i32, %arg2: i32, %arg3: memref<16x32xbf16, #tpu.memory_space<vmem>>, %arg4: memref<32x32xbf16, #tpu.memory_space<vmem>>, %arg5: memref<1x32xf32, #tpu.memory_space<vmem>>, %arg6: memref<16x32xf32, #tpu.memory_space<vmem>>, %arg7: memref<16x32xf32, #tpu.memory_space<vmem>>, %arg8: memref<16x32xf32, #tpu.memory_space<vmem>>) attributes {dimension_semantics = [#tpu.dimension_semantics<parallel>, #tpu.dimension_semantics<parallel>, #tpu.dimension_semantics<arbitrary>], iteration_bounds = array<i64: 1, 1, 1>, scalar_prefetch = 0 : i64, scratch_operands = 1 : i64, tpu.core_type = #tpu.core_type<tc>, window_params = [{transform_indices = @transform_0, window_bounds = array<i64: 16, 32>}, {transform_indices = @transform_1, window_bounds = array<i64: 32, 32>}, {transform_indices = @transform_2, window_bounds = array<i64: 1, 32>}, {transform_indices = @transform_3, window_bounds = array<i64: 16, 32>}, {transform_indices = @transform_4, window_bounds = array<i64: 16, 32>}]} {
    %c0_i32 = arith.constant 0 : i32
    %0 = arith.cmpi eq, %arg2, %c0_i32 : i32
    %1 = arith.extui %0 : i1 to i32
    %c0_i32_0 = arith.constant 0 : i32
    %2 = arith.cmpi ne, %1, %c0_i32_0 : i32
    scf.if %2 {
      %cst_10 = arith.constant 0.000000e+00 : f32
      %12 = vector.broadcast %cst_10 : f32 to vector<16x32xf32>
      %c0_11 = arith.constant 0 : index
      %c0_12 = arith.constant 0 : index
      %13 = vector.load %arg8[%c0_11, %c0_12] : memref<16x32xf32, #tpu.memory_space<vmem>>, vector<16x32xf32>
      tpu.vector_store %arg8[%c0_11, %c0_12], %12 {strides = array<i32>} : memref<16x32xf32, #tpu.memory_space<vmem>>, vector<16x32xf32>,
    } else {
    }
    %c0 = arith.constant 0 : index
    %c0_1 = arith.constant 0 : index
    %3 = vector.load %arg8[%c0, %c0_1] : memref<16x32xf32, #tpu.memory_space<vmem>>, vector<16x32xf32>
    %c0_2 = arith.constant 0 : index
    %c0_3 = arith.constant 0 : index
    %4 = vector.load %arg3[%c0_2, %c0_3] : memref<16x32xbf16, #tpu.memory_space<vmem>>, vector<16x32xbf16>
    %c0_4 = arith.constant 0 : index
    %c0_5 = arith.constant 0 : index
    %5 = vector.load %arg4[%c0_4, %c0_5] : memref<32x32xbf16, #tpu.memory_space<vmem>>, vector<32x32xbf16>
    %cst = arith.constant dense<0.000000e+00> : vector<16x32xf32>
    %6 = tpu.matmul %4, %5, %cst {dimension_numbers = #tpu.dot_dimension_numbers<[1], [0], [0], [1], [0, 0, 1, 1], [], []>} : vector<16x32xbf16>, vector<32x32xbf16>, vector<16x32xf32> -> vector<16x32xf32>
    %7 = arith.addf %3, %6 : vector<16x32xf32>
    %c0_6 = arith.constant 0 : index
    %c0_7 = arith.constant 0 : index
    %8 = vector.load %arg8[%c0_6, %c0_7] : memref<16x32xf32, #tpu.memory_space<vmem>>, vector<16x32xf32>
    tpu.vector_store %arg8[%c0_6, %c0_7], %7 {strides = array<i32>} : memref<16x32xf32, #tpu.memory_space<vmem>>, vector<16x32xf32>,
    %c0_i32_8 = arith.constant 0 : i32
    %9 = arith.cmpi eq, %arg2, %c0_i32_8 : i32
    %10 = arith.extui %9 : i1 to i32
    %c0_i32_9 = arith.constant 0 : i32
    %11 = arith.cmpi ne, %10, %c0_i32_9 : i32
    scf.if %11 {
      %c0_10 = arith.constant 0 : index
      %c0_11 = arith.constant 0 : index
      %12 = vector.load %arg8[%c0_10, %c0_11] : memref<16x32xf32, #tpu.memory_space<vmem>>, vector<16x32xf32>
      %c0_12 = arith.constant 0 : index
      %c0_13 = arith.constant 0 : index
      %13 = vector.load %arg5[%c0_12, %c0_13] : memref<1x32xf32, #tpu.memory_space<vmem>>, vector<1x32xf32>
      %14 = vector.broadcast %13 : vector<1x32xf32> to vector<16x32xf32>
      %15 = arith.addf %12, %14 : vector<16x32xf32>
      %c0_14 = arith.constant 0 : index
      %c0_15 = arith.constant 0 : index
      %16 = vector.load %arg6[%c0_14, %c0_15] : memref<16x32xf32, #tpu.memory_space<vmem>>, vector<16x32xf32>
      %17 = arith.addf %15, %16 : vector<16x32xf32>
      %c0_16 = arith.constant 0 : index
      %c0_17 = arith.constant 0 : index
      %18 = vector.load %arg7[%c0_16, %c0_17] : memref<16x32xf32, #tpu.memory_space<vmem>>, vector<16x32xf32>
      tpu.vector_store %arg7[%c0_16, %c0_17], %17 {strides = array<i32>} : memref<16x32xf32, #tpu.memory_space<vmem>>, vector<16x32xf32>,
    } else {
    }
    return
  }
  func.func @transform_0(%arg0: i32, %arg1: i32, %arg2: i32) -> (i32, i32) {
    %c0_i32 = arith.constant 0 : i32
    return %arg0, %arg2 : i32, i32
  }
  func.func @transform_1(%arg0: i32, %arg1: i32, %arg2: i32) -> (i32, i32) {
    %c0_i32 = arith.constant 0 : i32
    return %arg2, %arg1 : i32, i32
  }
  func.func @transform_2(%arg0: i32, %arg1: i32, %arg2: i32) -> (i32, i32) {
    %c0_i32 = arith.constant 0 : i32
    %c0_i32_0 = arith.constant 0 : i32
    return %c0_i32, %arg1 : i32, i32
  }
  func.func @transform_3(%arg0: i32, %arg1: i32, %arg2: i32) -> (i32, i32) {
    %c0_i32 = arith.constant 0 : i32
    return %arg0, %arg1 : i32, i32
  }
  func.func @transform_4(%arg0: i32, %arg1: i32, %arg2: i32) -> (i32, i32) {
    %c0_i32 = arith.constant 0 : i32
    return %arg0, %arg1 : i32, i32
  }
}

module attributes {stable_mosaic.version = 11 : i64} {
  func.func @_ln_matmul_kernel(%arg0: i32, %arg1: i32, %arg2: memref<16x32xf32, #tpu.memory_space<vmem>>, %arg3: memref<1x32xf32, #tpu.memory_space<vmem>>, %arg4: memref<1x32xf32, #tpu.memory_space<vmem>>, %arg5: memref<32x32xbf16, #tpu.memory_space<vmem>>, %arg6: memref<1x32xf32, #tpu.memory_space<vmem>>, %arg7: memref<16x32xbf16, #tpu.memory_space<vmem>>) attributes {dimension_semantics = [#tpu.dimension_semantics<parallel>, #tpu.dimension_semantics<parallel>], iteration_bounds = array<i64: 1, 1>, scalar_prefetch = 0 : i64, scratch_operands = 0 : i64, tpu.core_type = #tpu.core_type<tc>, window_params = [{transform_indices = @transform_0, window_bounds = array<i64: 16, 32>}, {pipeline_mode = #tpu.pipeline_mode<synchronous>, transform_indices = @transform_1, window_bounds = array<i64: 1, 32>}, {pipeline_mode = #tpu.pipeline_mode<synchronous>, transform_indices = @transform_2, window_bounds = array<i64: 1, 32>}, {transform_indices = @transform_3, window_bounds = array<i64: 32, 32>}, {transform_indices = @transform_4, window_bounds = array<i64: 1, 32>}, {transform_indices = @transform_5, window_bounds = array<i64: 16, 32>}]} {
    %c0 = arith.constant 0 : index
    %c0_0 = arith.constant 0 : index
    %0 = vector.load %arg2[%c0, %c0_0] : memref<16x32xf32, #tpu.memory_space<vmem>>, vector<16x32xf32>
    %cst = arith.constant dense<0.000000e+00> : vector<16xf32>
    %1 = vector.multi_reduction <add>, %0, %cst [1] : vector<16x32xf32> to vector<16xf32>
    %2 = vector.shape_cast %1 : vector<16xf32> to vector<16x1xf32>
    %cst_1 = arith.constant 3.200000e+01 : f32
    %3 = vector.broadcast %cst_1 : f32 to vector<16x1xf32>
    %4 = arith.divf %2, %3 : vector<16x1xf32>
    %5 = vector.broadcast %4 : vector<16x1xf32> to vector<16x32xf32>
    %6 = arith.subf %0, %5 : vector<16x32xf32>
    %7 = vector.broadcast %4 : vector<16x1xf32> to vector<16x32xf32>
    %8 = arith.subf %0, %7 : vector<16x32xf32>
    %9 = arith.mulf %6, %8 : vector<16x32xf32>
    %cst_2 = arith.constant dense<0.000000e+00> : vector<16xf32>
    %10 = vector.multi_reduction <add>, %9, %cst_2 [1] : vector<16x32xf32> to vector<16xf32>
    %11 = vector.shape_cast %10 : vector<16xf32> to vector<16x1xf32>
    %cst_3 = arith.constant 3.200000e+01 : f32
    %12 = vector.broadcast %cst_3 : f32 to vector<16x1xf32>
    %13 = arith.divf %11, %12 : vector<16x1xf32>
    %14 = vector.broadcast %4 : vector<16x1xf32> to vector<16x32xf32>
    %15 = arith.subf %0, %14 : vector<16x32xf32>
    %cst_4 = arith.constant 9.99999974E-6 : f32
    %16 = vector.broadcast %cst_4 : f32 to vector<16x1xf32>
    %17 = arith.addf %13, %16 : vector<16x1xf32>
    %18 = math.rsqrt %17 : vector<16x1xf32>
    %19 = vector.broadcast %18 : vector<16x1xf32> to vector<16x32xf32>
    %20 = arith.mulf %15, %19 : vector<16x32xf32>
    %c0_5 = arith.constant 0 : index
    %c0_6 = arith.constant 0 : index
    %21 = vector.load %arg3[%c0_5, %c0_6] : memref<1x32xf32, #tpu.memory_space<vmem>>, vector<1x32xf32>
    %22 = vector.broadcast %21 : vector<1x32xf32> to vector<16x32xf32>
    %23 = arith.mulf %20, %22 : vector<16x32xf32>
    %c0_7 = arith.constant 0 : index
    %c0_8 = arith.constant 0 : index
    %24 = vector.load %arg4[%c0_7, %c0_8] : memref<1x32xf32, #tpu.memory_space<vmem>>, vector<1x32xf32>
    %25 = vector.broadcast %24 : vector<1x32xf32> to vector<16x32xf32>
    %26 = arith.addf %23, %25 : vector<16x32xf32>
    %27 = arith.truncf %26 : vector<16x32xf32> to vector<16x32xbf16>
    %c0_9 = arith.constant 0 : index
    %c0_10 = arith.constant 0 : index
    %28 = vector.load %arg5[%c0_9, %c0_10] : memref<32x32xbf16, #tpu.memory_space<vmem>>, vector<32x32xbf16>
    %cst_11 = arith.constant dense<0.000000e+00> : vector<16x32xf32>
    %29 = tpu.matmul %27, %28, %cst_11 {dimension_numbers = #tpu.dot_dimension_numbers<[1], [0], [0], [1], [0, 0, 1, 1], [], []>} : vector<16x32xbf16>, vector<32x32xbf16>, vector<16x32xf32> -> vector<16x32xf32>
    %c0_12 = arith.constant 0 : index
    %c0_13 = arith.constant 0 : index
    %30 = vector.load %arg6[%c0_12, %c0_13] : memref<1x32xf32, #tpu.memory_space<vmem>>, vector<1x32xf32>
    %31 = vector.broadcast %30 : vector<1x32xf32> to vector<16x32xf32>
    %32 = arith.addf %29, %31 : vector<16x32xf32>
    %33 = arith.truncf %32 : vector<16x32xf32> to vector<16x32xbf16>
    %c0_14 = arith.constant 0 : index
    %c0_15 = arith.constant 0 : index
    %34 = vector.load %arg7[%c0_14, %c0_15] : memref<16x32xbf16, #tpu.memory_space<vmem>>, vector<16x32xbf16>
    tpu.vector_store %arg7[%c0_14, %c0_15], %33 {strides = array<i32>} : memref<16x32xbf16, #tpu.memory_space<vmem>>, vector<16x32xbf16>,
    return
  }
  func.func @transform_0(%arg0: i32, %arg1: i32) -> (i32, i32) {
    %c0_i32 = arith.constant 0 : i32
    %c0_i32_0 = arith.constant 0 : i32
    return %arg0, %c0_i32 : i32, i32
  }
  func.func @transform_1(%arg0: i32, %arg1: i32) -> (i32, i32) {
    %c0_i32 = arith.constant 0 : i32
    %c0_i32_0 = arith.constant 0 : i32
    %c0_i32_1 = arith.constant 0 : i32
    return %c0_i32, %c0_i32_0 : i32, i32
  }
  func.func @transform_2(%arg0: i32, %arg1: i32) -> (i32, i32) {
    %c0_i32 = arith.constant 0 : i32
    %c0_i32_0 = arith.constant 0 : i32
    %c0_i32_1 = arith.constant 0 : i32
    return %c0_i32, %c0_i32_0 : i32, i32
  }
  func.func @transform_3(%arg0: i32, %arg1: i32) -> (i32, i32) {
    %c0_i32 = arith.constant 0 : i32
    %c0_i32_0 = arith.constant 0 : i32
    return %c0_i32, %arg1 : i32, i32
  }
  func.func @transform_4(%arg0: i32, %arg1: i32) -> (i32, i32) {
    %c0_i32 = arith.constant 0 : i32
    %c0_i32_0 = arith.constant 0 : i32
    return %c0_i32, %arg1 : i32, i32
  }
  func.func @transform_5(%arg0: i32, %arg1: i32) -> (i32, i32) {
    %c0_i32 = arith.constant 0 : i32
    return %arg0, %arg1 : i32, i32
  }
}

module attributes {stable_mosaic.version = 11 : i64} {
  func.func @_matmul_kernel(%arg0: i32, %arg1: i32, %arg2: i32, %arg3: memref<32x32xbf16, #tpu.memory_space<vmem>>, %arg4: memref<32x64xbf16, #tpu.memory_space<vmem>>, %arg5: memref<1x64xf32, #tpu.memory_space<vmem>>, %arg6: memref<32x64xbf16, #tpu.memory_space<vmem>>, %arg7: memref<32x64xf32, #tpu.memory_space<vmem>>) attributes {dimension_semantics = [#tpu.dimension_semantics<parallel>, #tpu.dimension_semantics<parallel>, #tpu.dimension_semantics<arbitrary>], iteration_bounds = array<i64: 1, 1, 1>, scalar_prefetch = 0 : i64, scratch_operands = 1 : i64, tpu.core_type = #tpu.core_type<tc>, window_params = [{transform_indices = @transform_0, window_bounds = array<i64: 32, 32>}, {transform_indices = @transform_1, window_bounds = array<i64: 32, 64>}, {transform_indices = @transform_2, window_bounds = array<i64: 1, 64>}, {transform_indices = @transform_3, window_bounds = array<i64: 32, 64>}]} {
    %c0_i32 = arith.constant 0 : i32
    %0 = arith.cmpi eq, %arg2, %c0_i32 : i32
    %1 = arith.extui %0 : i1 to i32
    %c0_i32_0 = arith.constant 0 : i32
    %2 = arith.cmpi ne, %1, %c0_i32_0 : i32
    scf.if %2 {
      %cst_10 = arith.constant 0.000000e+00 : f32
      %12 = vector.broadcast %cst_10 : f32 to vector<32x64xf32>
      %c0_11 = arith.constant 0 : index
      %c0_12 = arith.constant 0 : index
      %13 = vector.load %arg7[%c0_11, %c0_12] : memref<32x64xf32, #tpu.memory_space<vmem>>, vector<32x64xf32>
      tpu.vector_store %arg7[%c0_11, %c0_12], %12 {strides = array<i32>} : memref<32x64xf32, #tpu.memory_space<vmem>>, vector<32x64xf32>,
    } else {
    }
    %c0 = arith.constant 0 : index
    %c0_1 = arith.constant 0 : index
    %3 = vector.load %arg7[%c0, %c0_1] : memref<32x64xf32, #tpu.memory_space<vmem>>, vector<32x64xf32>
    %c0_2 = arith.constant 0 : index
    %c0_3 = arith.constant 0 : index
    %4 = vector.load %arg3[%c0_2, %c0_3] : memref<32x32xbf16, #tpu.memory_space<vmem>>, vector<32x32xbf16>
    %c0_4 = arith.constant 0 : index
    %c0_5 = arith.constant 0 : index
    %5 = vector.load %arg4[%c0_4, %c0_5] : memref<32x64xbf16, #tpu.memory_space<vmem>>, vector<32x64xbf16>
    %cst = arith.constant dense<0.000000e+00> : vector<32x64xf32>
    %6 = tpu.matmul %4, %5, %cst {dimension_numbers = #tpu.dot_dimension_numbers<[1], [0], [0], [1], [0, 0, 1, 1], [], []>} : vector<32x32xbf16>, vector<32x64xbf16>, vector<32x64xf32> -> vector<32x64xf32>
    %7 = arith.addf %3, %6 : vector<32x64xf32>
    %c0_6 = arith.constant 0 : index
    %c0_7 = arith.constant 0 : index
    %8 = vector.load %arg7[%c0_6, %c0_7] : memref<32x64xf32, #tpu.memory_space<vmem>>, vector<32x64xf32>
    tpu.vector_store %arg7[%c0_6, %c0_7], %7 {strides = array<i32>} : memref<32x64xf32, #tpu.memory_space<vmem>>, vector<32x64xf32>,
    %c0_i32_8 = arith.constant 0 : i32
    %9 = arith.cmpi eq, %arg2, %c0_i32_8 : i32
    %10 = arith.extui %9 : i1 to i32
    %c0_i32_9 = arith.constant 0 : i32
    %11 = arith.cmpi ne, %10, %c0_i32_9 : i32
    scf.if %11 {
      %c0_10 = arith.constant 0 : index
      %c0_11 = arith.constant 0 : index
      %12 = vector.load %arg7[%c0_10, %c0_11] : memref<32x64xf32, #tpu.memory_space<vmem>>, vector<32x64xf32>
      %c0_12 = arith.constant 0 : index
      %c0_13 = arith.constant 0 : index
      %13 = vector.load %arg5[%c0_12, %c0_13] : memref<1x64xf32, #tpu.memory_space<vmem>>, vector<1x64xf32>
      %14 = vector.broadcast %13 : vector<1x64xf32> to vector<32x64xf32>
      %15 = arith.addf %12, %14 : vector<32x64xf32>
      %16 = arith.truncf %15 : vector<32x64xf32> to vector<32x64xbf16>
      %c0_14 = arith.constant 0 : index
      %c0_15 = arith.constant 0 : index
      %17 = vector.load %arg6[%c0_14, %c0_15] : memref<32x64xbf16, #tpu.memory_space<vmem>>, vector<32x64xbf16>
      tpu.vector_store %arg6[%c0_14, %c0_15], %16 {strides = array<i32>} : memref<32x64xbf16, #tpu.memory_space<vmem>>, vector<32x64xbf16>,
    } else {
    }
    return
  }
  func.func @transform_0(%arg0: i32, %arg1: i32, %arg2: i32) -> (i32, i32) {
    %c0_i32 = arith.constant 0 : i32
    return %arg0, %arg2 : i32, i32
  }
  func.func @transform_1(%arg0: i32, %arg1: i32, %arg2: i32) -> (i32, i32) {
    %c0_i32 = arith.constant 0 : i32
    return %arg2, %arg1 : i32, i32
  }
  func.func @transform_2(%arg0: i32, %arg1: i32, %arg2: i32) -> (i32, i32) {
    %c0_i32 = arith.constant 0 : i32
    %c0_i32_0 = arith.constant 0 : i32
    return %c0_i32, %arg1 : i32, i32
  }
  func.func @transform_3(%arg0: i32, %arg1: i32, %arg2: i32) -> (i32, i32) {
    %c0_i32 = arith.constant 0 : i32
    return %arg0, %arg1 : i32, i32
  }
}

module attributes {stable_mosaic.version = 11 : i64} {
  func.func @_attention_kernel(%arg0: i32, %arg1: i32, %arg2: memref<1x4x8x8xbf16, #tpu.memory_space<vmem>>, %arg3: memref<1x4x16x8xbf16, #tpu.memory_space<vmem>>, %arg4: memref<1x4x16x8xbf16, #tpu.memory_space<vmem>>, %arg5: memref<1x4x8x8xbf16, #tpu.memory_space<vmem>>) attributes {dimension_semantics = [#tpu.dimension_semantics<parallel>, #tpu.dimension_semantics<parallel>], iteration_bounds = array<i64: 2, 1>, scalar_prefetch = 0 : i64, scratch_operands = 0 : i64, tpu.core_type = #tpu.core_type<tc>, window_params = [{transform_indices = @transform_0, window_bounds = array<i64: 1, 4, 8, 8>}, {transform_indices = @transform_1, window_bounds = array<i64: 1, 4, 16, 8>}, {transform_indices = @transform_2, window_bounds = array<i64: 1, 4, 16, 8>}, {transform_indices = @transform_3, window_bounds = array<i64: 1, 4, 8, 8>}]} {
    %c0 = arith.constant 0 : index
    %c0_0 = arith.constant 0 : index
    %c0_1 = arith.constant 0 : index
    %c0_2 = arith.constant 0 : index
    %0 = vector.load %arg2[%c0, %c0_0, %c0_1, %c0_2] : memref<1x4x8x8xbf16, #tpu.memory_space<vmem>>, vector<1x4x8x8xbf16>
    %1 = vector.shape_cast %0 : vector<1x4x8x8xbf16> to vector<4x8x8xbf16>
    %c0_3 = arith.constant 0 : index
    %c0_4 = arith.constant 0 : index
    %c0_5 = arith.constant 0 : index
    %c0_6 = arith.constant 0 : index
    %2 = vector.load %arg3[%c0_3, %c0_4, %c0_5, %c0_6] : memref<1x4x16x8xbf16, #tpu.memory_space<vmem>>, vector<1x4x16x8xbf16>
    %3 = vector.shape_cast %2 : vector<1x4x16x8xbf16> to vector<4x16x8xbf16>
    %c0_7 = arith.constant 0 : index
    %c0_8 = arith.constant 0 : index
    %c0_9 = arith.constant 0 : index
    %c0_10 = arith.constant 0 : index
    %4 = vector.load %arg4[%c0_7, %c0_8, %c0_9, %c0_10] : memref<1x4x16x8xbf16, #tpu.memory_space<vmem>>, vector<1x4x16x8xbf16>
    %5 = vector.shape_cast %4 : vector<1x4x16x8xbf16> to vector<4x16x8xbf16>
    "tpu.trace_start"() <{level = 10 : i32, message = "gqd,gkd->gqk"}> : () -> ()
    %cst = arith.constant dense<0.000000e+00> : vector<4x8x16xf32>
    %6 = tpu.matmul %1, %3, %cst {dimension_numbers = #tpu.dot_dimension_numbers<[2], [2], [1], [1], [0, 0, 0, 1, 1, 1], [0], [0]>} : vector<4x8x8xbf16>, vector<4x16x8xbf16>, vector<4x8x16xf32> -> vector<4x8x16xf32>
    "tpu.trace_stop"() : () -> ()
    %cst_11 = arith.constant 0.353553385 : f32
    %7 = vector.broadcast %cst_11 : f32 to vector<4x8x16xf32>
    %8 = arith.mulf %6, %7 : vector<4x8x16xf32>
    %cst_12 = arith.constant dense<0xFF800000> : vector<4x8xf32>
    %9 = vector.multi_reduction <maximumf>, %8, %cst_12 [2] : vector<4x8x16xf32> to vector<4x8xf32>
    %10 = vector.shape_cast %9 : vector<4x8xf32> to vector<4x8x1xf32>
    %11 = vector.broadcast %10 : vector<4x8x1xf32> to vector<4x8x16xf32>
    %12 = arith.subf %8, %11 : vector<4x8x16xf32>
    %13 = math.exp %12 : vector<4x8x16xf32>
    %cst_13 = arith.constant dense<0.000000e+00> : vector<4x8xf32>
    %14 = vector.multi_reduction <add>, %13, %cst_13 [2] : vector<4x8x16xf32> to vector<4x8xf32>
    %15 = vector.shape_cast %14 : vector<4x8xf32> to vector<4x8x1xf32>
    %16 = tpu.reciprocal %15 {approx = true} : vector<4x8x1xf32> -> vector<4x8x1xf32>
    %17 = vector.broadcast %16 : vector<4x8x1xf32> to vector<4x8x16xf32>
    %18 = arith.mulf %13, %17 : vector<4x8x16xf32>
    %19 = arith.truncf %18 : vector<4x8x16xf32> to vector<4x8x16xbf16>
    "tpu.trace_start"() <{level = 10 : i32, message = "gqk,gkd->gqd"}> : () -> ()
    %cst_14 = arith.constant dense<0.000000e+00> : vector<4x8x8xf32>
    %20 = tpu.matmul %19, %5, %cst_14 {dimension_numbers = #tpu.dot_dimension_numbers<[2], [1], [1], [2], [0, 0, 0, 1, 1, 2], [0], [0]>} : vector<4x8x16xbf16>, vector<4x16x8xbf16>, vector<4x8x8xf32> -> vector<4x8x8xf32>
    "tpu.trace_stop"() : () -> ()
    %21 = arith.truncf %20 : vector<4x8x8xf32> to vector<4x8x8xbf16>
    %c0_15 = arith.constant 0 : index
    %c0_16 = arith.constant 0 : index
    %c0_17 = arith.constant 0 : index
    %c0_18 = arith.constant 0 : index
    %22 = vector.load %arg5[%c0_15, %c0_16, %c0_17, %c0_18] : memref<1x4x8x8xbf16, #tpu.memory_space<vmem>>, vector<1x4x8x8xbf16>
    %23 = vector.shape_cast %22 : vector<1x4x8x8xbf16> to vector<4x8x8xbf16>
    %24 = vector.shape_cast %21 : vector<4x8x8xbf16> to vector<1x4x8x8xbf16>
    tpu.vector_store %arg5[%c0_15, %c0_16, %c0_17, %c0_18], %24 {strides = array<i32>} : memref<1x4x8x8xbf16, #tpu.memory_space<vmem>>, vector<1x4x8x8xbf16>,
    return
  }
  func.func @transform_0(%arg0: i32, %arg1: i32) -> (i32, i32, i32, i32) {
    %c0_i32 = arith.constant 0 : i32
    %c0_i32_0 = arith.constant 0 : i32
    %c0_i32_1 = arith.constant 0 : i32
    return %arg0, %arg1, %c0_i32, %c0_i32_0 : i32, i32, i32, i32
  }
  func.func @transform_1(%arg0: i32, %arg1: i32) -> (i32, i32, i32, i32) {
    %c0_i32 = arith.constant 0 : i32
    %c0_i32_0 = arith.constant 0 : i32
    %c0_i32_1 = arith.constant 0 : i32
    return %arg0, %arg1, %c0_i32, %c0_i32_0 : i32, i32, i32, i32
  }
  func.func @transform_2(%arg0: i32, %arg1: i32) -> (i32, i32, i32, i32) {
    %c0_i32 = arith.constant 0 : i32
    %c0_i32_0 = arith.constant 0 : i32
    %c0_i32_1 = arith.constant 0 : i32
    return %arg0, %arg1, %c0_i32, %c0_i32_0 : i32, i32, i32, i32
  }
  func.func @transform_3(%arg0: i32, %arg1: i32) -> (i32, i32, i32, i32) {
    %c0_i32 = arith.constant 0 : i32
    %c0_i32_0 = arith.constant 0 : i32
    %c0_i32_1 = arith.constant 0 : i32
    return %arg0, %arg1, %c0_i32, %c0_i32_0 : i32, i32, i32, i32
  }
}

module attributes {stable_mosaic.version = 11 : i64} {
  func.func @_ln_matmul_kernel(%arg0: i32, %arg1: i32, %arg2: memref<16x32xf32, #tpu.memory_space<vmem>>, %arg3: memref<1x32xf32, #tpu.memory_space<vmem>>, %arg4: memref<1x32xf32, #tpu.memory_space<vmem>>, %arg5: memref<32x128xbf16, #tpu.memory_space<vmem>>, %arg6: memref<1x128xf32, #tpu.memory_space<vmem>>, %arg7: memref<16x128xf32, #tpu.memory_space<vmem>>) attributes {dimension_semantics = [#tpu.dimension_semantics<parallel>, #tpu.dimension_semantics<parallel>], iteration_bounds = array<i64: 1, 1>, scalar_prefetch = 0 : i64, scratch_operands = 0 : i64, tpu.core_type = #tpu.core_type<tc>, window_params = [{transform_indices = @transform_0, window_bounds = array<i64: 16, 32>}, {pipeline_mode = #tpu.pipeline_mode<synchronous>, transform_indices = @transform_1, window_bounds = array<i64: 1, 32>}, {pipeline_mode = #tpu.pipeline_mode<synchronous>, transform_indices = @transform_2, window_bounds = array<i64: 1, 32>}, {transform_indices = @transform_3, window_bounds = array<i64: 32, 128>}, {transform_indices = @transform_4, window_bounds = array<i64: 1, 128>}, {transform_indices = @transform_5, window_bounds = array<i64: 16, 128>}]} {
    %c0 = arith.constant 0 : index
    %c0_0 = arith.constant 0 : index
    %0 = vector.load %arg2[%c0, %c0_0] : memref<16x32xf32, #tpu.memory_space<vmem>>, vector<16x32xf32>
    %cst = arith.constant dense<0.000000e+00> : vector<16xf32>
    %1 = vector.multi_reduction <add>, %0, %cst [1] : vector<16x32xf32> to vector<16xf32>
    %2 = vector.shape_cast %1 : vector<16xf32> to vector<16x1xf32>
    %cst_1 = arith.constant 3.200000e+01 : f32
    %3 = vector.broadcast %cst_1 : f32 to vector<16x1xf32>
    %4 = arith.divf %2, %3 : vector<16x1xf32>
    %5 = vector.broadcast %4 : vector<16x1xf32> to vector<16x32xf32>
    %6 = arith.subf %0, %5 : vector<16x32xf32>
    %7 = vector.broadcast %4 : vector<16x1xf32> to vector<16x32xf32>
    %8 = arith.subf %0, %7 : vector<16x32xf32>
    %9 = arith.mulf %6, %8 : vector<16x32xf32>
    %cst_2 = arith.constant dense<0.000000e+00> : vector<16xf32>
    %10 = vector.multi_reduction <add>, %9, %cst_2 [1] : vector<16x32xf32> to vector<16xf32>
    %11 = vector.shape_cast %10 : vector<16xf32> to vector<16x1xf32>
    %cst_3 = arith.constant 3.200000e+01 : f32
    %12 = vector.broadcast %cst_3 : f32 to vector<16x1xf32>
    %13 = arith.divf %11, %12 : vector<16x1xf32>
    %14 = vector.broadcast %4 : vector<16x1xf32> to vector<16x32xf32>
    %15 = arith.subf %0, %14 : vector<16x32xf32>
    %cst_4 = arith.constant 9.99999974E-6 : f32
    %16 = vector.broadcast %cst_4 : f32 to vector<16x1xf32>
    %17 = arith.addf %13, %16 : vector<16x1xf32>
    %18 = math.rsqrt %17 : vector<16x1xf32>
    %19 = vector.broadcast %18 : vector<16x1xf32> to vector<16x32xf32>
    %20 = arith.mulf %15, %19 : vector<16x32xf32>
    %c0_5 = arith.constant 0 : index
    %c0_6 = arith.constant 0 : index
    %21 = vector.load %arg3[%c0_5, %c0_6] : memref<1x32xf32, #tpu.memory_space<vmem>>, vector<1x32xf32>
    %22 = vector.broadcast %21 : vector<1x32xf32> to vector<16x32xf32>
    %23 = arith.mulf %20, %22 : vector<16x32xf32>
    %c0_7 = arith.constant 0 : index
    %c0_8 = arith.constant 0 : index
    %24 = vector.load %arg4[%c0_7, %c0_8] : memref<1x32xf32, #tpu.memory_space<vmem>>, vector<1x32xf32>
    %25 = vector.broadcast %24 : vector<1x32xf32> to vector<16x32xf32>
    %26 = arith.addf %23, %25 : vector<16x32xf32>
    %27 = arith.truncf %26 : vector<16x32xf32> to vector<16x32xbf16>
    %c0_9 = arith.constant 0 : index
    %c0_10 = arith.constant 0 : index
    %28 = vector.load %arg5[%c0_9, %c0_10] : memref<32x128xbf16, #tpu.memory_space<vmem>>, vector<32x128xbf16>
    %cst_11 = arith.constant dense<0.000000e+00> : vector<16x128xf32>
    %29 = tpu.matmul %27, %28, %cst_11 {dimension_numbers = #tpu.dot_dimension_numbers<[1], [0], [0], [1], [0, 0, 1, 1], [], []>} : vector<16x32xbf16>, vector<32x128xbf16>, vector<16x128xf32> -> vector<16x128xf32>
    %c0_12 = arith.constant 0 : index
    %c0_13 = arith.constant 0 : index
    %30 = vector.load %arg6[%c0_12, %c0_13] : memref<1x128xf32, #tpu.memory_space<vmem>>, vector<1x128xf32>
    %31 = vector.broadcast %30 : vector<1x128xf32> to vector<16x128xf32>
    %32 = arith.addf %29, %31 : vector<16x128xf32>
    %c0_14 = arith.constant 0 : index
    %c0_15 = arith.constant 0 : index
    %33 = vector.load %arg7[%c0_14, %c0_15] : memref<16x128xf32, #tpu.memory_space<vmem>>, vector<16x128xf32>
    tpu.vector_store %arg7[%c0_14, %c0_15], %32 {strides = array<i32>} : memref<16x128xf32, #tpu.memory_space<vmem>>, vector<16x128xf32>,
    return
  }
  func.func @transform_0(%arg0: i32, %arg1: i32) -> (i32, i32) {
    %c0_i32 = arith.constant 0 : i32
    %c0_i32_0 = arith.constant 0 : i32
    return %arg0, %c0_i32 : i32, i32
  }
  func.func @transform_1(%arg0: i32, %arg1: i32) -> (i32, i32) {
    %c0_i32 = arith.constant 0 : i32
    %c0_i32_0 = arith.constant 0 : i32
    %c0_i32_1 = arith.constant 0 : i32
    return %c0_i32, %c0_i32_0 : i32, i32
  }
  func.func @transform_2(%arg0: i32, %arg1: i32) -> (i32, i32) {
    %c0_i32 = arith.constant 0 : i32
    %c0_i32_0 = arith.constant 0 : i32
    %c0_i32_1 = arith.constant 0 : i32
    return %c0_i32, %c0_i32_0 : i32, i32
  }
  func.func @transform_3(%arg0: i32, %arg1: i32) -> (i32, i32) {
    %c0_i32 = arith.constant 0 : i32
    %c0_i32_0 = arith.constant 0 : i32
    return %c0_i32, %arg1 : i32, i32
  }
  func.func @transform_4(%arg0: i32, %arg1: i32) -> (i32, i32) {
    %c0_i32 = arith.constant 0 : i32
    %c0_i32_0 = arith.constant 0 : i32
    return %c0_i32, %arg1 : i32, i32
  }
  func.func @transform_5(%arg0: i32, %arg1: i32) -> (i32, i32) {
    %c0_i32 = arith.constant 0 : i32
    return %arg0, %arg1 : i32, i32
  }
}

module attributes {stable_mosaic.version = 11 : i64} {
  func.func @_matmul_kernel(%arg0: i32, %arg1: i32, %arg2: i32, %arg3: memref<16x128xbf16, #tpu.memory_space<vmem>>, %arg4: memref<128x32xbf16, #tpu.memory_space<vmem>>, %arg5: memref<1x32xf32, #tpu.memory_space<vmem>>, %arg6: memref<16x32xf32, #tpu.memory_space<vmem>>, %arg7: memref<16x32xf32, #tpu.memory_space<vmem>>, %arg8: memref<16x32xf32, #tpu.memory_space<vmem>>) attributes {dimension_semantics = [#tpu.dimension_semantics<parallel>, #tpu.dimension_semantics<parallel>, #tpu.dimension_semantics<arbitrary>], iteration_bounds = array<i64: 1, 1, 1>, scalar_prefetch = 0 : i64, scratch_operands = 1 : i64, tpu.core_type = #tpu.core_type<tc>, window_params = [{transform_indices = @transform_0, window_bounds = array<i64: 16, 128>}, {transform_indices = @transform_1, window_bounds = array<i64: 128, 32>}, {transform_indices = @transform_2, window_bounds = array<i64: 1, 32>}, {transform_indices = @transform_3, window_bounds = array<i64: 16, 32>}, {transform_indices = @transform_4, window_bounds = array<i64: 16, 32>}]} {
    %c0_i32 = arith.constant 0 : i32
    %0 = arith.cmpi eq, %arg2, %c0_i32 : i32
    %1 = arith.extui %0 : i1 to i32
    %c0_i32_0 = arith.constant 0 : i32
    %2 = arith.cmpi ne, %1, %c0_i32_0 : i32
    scf.if %2 {
      %cst_10 = arith.constant 0.000000e+00 : f32
      %12 = vector.broadcast %cst_10 : f32 to vector<16x32xf32>
      %c0_11 = arith.constant 0 : index
      %c0_12 = arith.constant 0 : index
      %13 = vector.load %arg8[%c0_11, %c0_12] : memref<16x32xf32, #tpu.memory_space<vmem>>, vector<16x32xf32>
      tpu.vector_store %arg8[%c0_11, %c0_12], %12 {strides = array<i32>} : memref<16x32xf32, #tpu.memory_space<vmem>>, vector<16x32xf32>,
    } else {
    }
    %c0 = arith.constant 0 : index
    %c0_1 = arith.constant 0 : index
    %3 = vector.load %arg8[%c0, %c0_1] : memref<16x32xf32, #tpu.memory_space<vmem>>, vector<16x32xf32>
    %c0_2 = arith.constant 0 : index
    %c0_3 = arith.constant 0 : index
    %4 = vector.load %arg3[%c0_2, %c0_3] : memref<16x128xbf16, #tpu.memory_space<vmem>>, vector<16x128xbf16>
    %c0_4 = arith.constant 0 : index
    %c0_5 = arith.constant 0 : index
    %5 = vector.load %arg4[%c0_4, %c0_5] : memref<128x32xbf16, #tpu.memory_space<vmem>>, vector<128x32xbf16>
    %cst = arith.constant dense<0.000000e+00> : vector<16x32xf32>
    %6 = tpu.matmul %4, %5, %cst {dimension_numbers = #tpu.dot_dimension_numbers<[1], [0], [0], [1], [0, 0, 1, 1], [], []>} : vector<16x128xbf16>, vector<128x32xbf16>, vector<16x32xf32> -> vector<16x32xf32>
    %7 = arith.addf %3, %6 : vector<16x32xf32>
    %c0_6 = arith.constant 0 : index
    %c0_7 = arith.constant 0 : index
    %8 = vector.load %arg8[%c0_6, %c0_7] : memref<16x32xf32, #tpu.memory_space<vmem>>, vector<16x32xf32>
    tpu.vector_store %arg8[%c0_6, %c0_7], %7 {strides = array<i32>} : memref<16x32xf32, #tpu.memory_space<vmem>>, vector<16x32xf32>,
    %c0_i32_8 = arith.constant 0 : i32
    %9 = arith.cmpi eq, %arg2, %c0_i32_8 : i32
    %10 = arith.extui %9 : i1 to i32
    %c0_i32_9 = arith.constant 0 : i32
    %11 = arith.cmpi ne, %10, %c0_i32_9 : i32
    scf.if %11 {
      %c0_10 = arith.constant 0 : index
      %c0_11 = arith.constant 0 : index
      %12 = vector.load %arg8[%c0_10, %c0_11] : memref<16x32xf32, #tpu.memory_space<vmem>>, vector<16x32xf32>
      %c0_12 = arith.constant 0 : index
      %c0_13 = arith.constant 0 : index
      %13 = vector.load %arg5[%c0_12, %c0_13] : memref<1x32xf32, #tpu.memory_space<vmem>>, vector<1x32xf32>
      %14 = vector.broadcast %13 : vector<1x32xf32> to vector<16x32xf32>
      %15 = arith.addf %12, %14 : vector<16x32xf32>
      %c0_14 = arith.constant 0 : index
      %c0_15 = arith.constant 0 : index
      %16 = vector.load %arg6[%c0_14, %c0_15] : memref<16x32xf32, #tpu.memory_space<vmem>>, vector<16x32xf32>
      %17 = arith.addf %15, %16 : vector<16x32xf32>
      %c0_16 = arith.constant 0 : index
      %c0_17 = arith.constant 0 : index
      %18 = vector.load %arg7[%c0_16, %c0_17] : memref<16x32xf32, #tpu.memory_space<vmem>>, vector<16x32xf32>
      tpu.vector_store %arg7[%c0_16, %c0_17], %17 {strides = array<i32>} : memref<16x32xf32, #tpu.memory_space<vmem>>, vector<16x32xf32>,
    } else {
    }
    return
  }
  func.func @transform_0(%arg0: i32, %arg1: i32, %arg2: i32) -> (i32, i32) {
    %c0_i32 = arith.constant 0 : i32
    return %arg0, %arg2 : i32, i32
  }
  func.func @transform_1(%arg0: i32, %arg1: i32, %arg2: i32) -> (i32, i32) {
    %c0_i32 = arith.constant 0 : i32
    return %arg2, %arg1 : i32, i32
  }
  func.func @transform_2(%arg0: i32, %arg1: i32, %arg2: i32) -> (i32, i32) {
    %c0_i32 = arith.constant 0 : i32
    %c0_i32_0 = arith.constant 0 : i32
    return %c0_i32, %arg1 : i32, i32
  }
  func.func @transform_3(%arg0: i32, %arg1: i32, %arg2: i32) -> (i32, i32) {
    %c0_i32 = arith.constant 0 : i32
    return %arg0, %arg1 : i32, i32
  }
  func.func @transform_4(%arg0: i32, %arg1: i32, %arg2: i32) -> (i32, i32) {
    %c0_i32 = arith.constant 0 : i32
    return %arg0, %arg1 : i32, i32
  }
}

module attributes {stable_mosaic.version = 11 : i64} {
  func.func @_ln_logits_kernel(%arg0: i32, %arg1: i32, %arg2: memref<16x32xf32, #tpu.memory_space<vmem>>, %arg3: memref<1x32xf32, #tpu.memory_space<vmem>>, %arg4: memref<1x32xf32, #tpu.memory_space<vmem>>, %arg5: memref<128x32xbf16, #tpu.memory_space<vmem>>, %arg6: memref<16x128xf32, #tpu.memory_space<vmem>>) attributes {dimension_semantics = [#tpu.dimension_semantics<parallel>, #tpu.dimension_semantics<parallel>], iteration_bounds = array<i64: 1, 1>, scalar_prefetch = 0 : i64, scratch_operands = 0 : i64, tpu.core_type = #tpu.core_type<tc>, window_params = [{transform_indices = @transform_0, window_bounds = array<i64: 16, 32>}, {pipeline_mode = #tpu.pipeline_mode<synchronous>, transform_indices = @transform_1, window_bounds = array<i64: 1, 32>}, {pipeline_mode = #tpu.pipeline_mode<synchronous>, transform_indices = @transform_2, window_bounds = array<i64: 1, 32>}, {transform_indices = @transform_3, window_bounds = array<i64: 128, 32>}, {transform_indices = @transform_4, window_bounds = array<i64: 16, 128>}]} {
    %c0 = arith.constant 0 : index
    %c0_0 = arith.constant 0 : index
    %0 = vector.load %arg2[%c0, %c0_0] : memref<16x32xf32, #tpu.memory_space<vmem>>, vector<16x32xf32>
    %cst = arith.constant dense<0.000000e+00> : vector<16xf32>
    %1 = vector.multi_reduction <add>, %0, %cst [1] : vector<16x32xf32> to vector<16xf32>
    %2 = vector.shape_cast %1 : vector<16xf32> to vector<16x1xf32>
    %cst_1 = arith.constant 3.200000e+01 : f32
    %3 = vector.broadcast %cst_1 : f32 to vector<16x1xf32>
    %4 = arith.divf %2, %3 : vector<16x1xf32>
    %5 = vector.broadcast %4 : vector<16x1xf32> to vector<16x32xf32>
    %6 = arith.subf %0, %5 : vector<16x32xf32>
    %7 = vector.broadcast %4 : vector<16x1xf32> to vector<16x32xf32>
    %8 = arith.subf %0, %7 : vector<16x32xf32>
    %9 = arith.mulf %6, %8 : vector<16x32xf32>
    %cst_2 = arith.constant dense<0.000000e+00> : vector<16xf32>
    %10 = vector.multi_reduction <add>, %9, %cst_2 [1] : vector<16x32xf32> to vector<16xf32>
    %11 = vector.shape_cast %10 : vector<16xf32> to vector<16x1xf32>
    %cst_3 = arith.constant 3.200000e+01 : f32
    %12 = vector.broadcast %cst_3 : f32 to vector<16x1xf32>
    %13 = arith.divf %11, %12 : vector<16x1xf32>
    %14 = vector.broadcast %4 : vector<16x1xf32> to vector<16x32xf32>
    %15 = arith.subf %0, %14 : vector<16x32xf32>
    %cst_4 = arith.constant 9.99999974E-6 : f32
    %16 = vector.broadcast %cst_4 : f32 to vector<16x1xf32>
    %17 = arith.addf %13, %16 : vector<16x1xf32>
    %18 = math.rsqrt %17 : vector<16x1xf32>
    %19 = vector.broadcast %18 : vector<16x1xf32> to vector<16x32xf32>
    %20 = arith.mulf %15, %19 : vector<16x32xf32>
    %c0_5 = arith.constant 0 : index
    %c0_6 = arith.constant 0 : index
    %21 = vector.load %arg3[%c0_5, %c0_6] : memref<1x32xf32, #tpu.memory_space<vmem>>, vector<1x32xf32>
    %22 = vector.broadcast %21 : vector<1x32xf32> to vector<16x32xf32>
    %23 = arith.mulf %20, %22 : vector<16x32xf32>
    %c0_7 = arith.constant 0 : index
    %c0_8 = arith.constant 0 : index
    %24 = vector.load %arg4[%c0_7, %c0_8] : memref<1x32xf32, #tpu.memory_space<vmem>>, vector<1x32xf32>
    %25 = vector.broadcast %24 : vector<1x32xf32> to vector<16x32xf32>
    %26 = arith.addf %23, %25 : vector<16x32xf32>
    %27 = arith.truncf %26 : vector<16x32xf32> to vector<16x32xbf16>
    %c0_9 = arith.constant 0 : index
    %c0_10 = arith.constant 0 : index
    %28 = vector.load %arg5[%c0_9, %c0_10] : memref<128x32xbf16, #tpu.memory_space<vmem>>, vector<128x32xbf16>
    %cst_11 = arith.constant dense<0.000000e+00> : vector<16x128xf32>
    %29 = tpu.matmul %27, %28, %cst_11 {dimension_numbers = #tpu.dot_dimension_numbers<[1], [1], [0], [0], [0, 0, 1, 0], [], []>} : vector<16x32xbf16>, vector<128x32xbf16>, vector<16x128xf32> -> vector<16x128xf32>
    %c0_12 = arith.constant 0 : index
    %c0_13 = arith.constant 0 : index
    %30 = vector.load %arg6[%c0_12, %c0_13] : memref<16x128xf32, #tpu.memory_space<vmem>>, vector<16x128xf32>
    tpu.vector_store %arg6[%c0_12, %c0_13], %29 {strides = array<i32>} : memref<16x128xf32, #tpu.memory_space<vmem>>, vector<16x128xf32>,
    return
  }
  func.func @transform_0(%arg0: i32, %arg1: i32) -> (i32, i32) {
    %c0_i32 = arith.constant 0 : i32
    %c0_i32_0 = arith.constant 0 : i32
    return %arg0, %c0_i32 : i32, i32
  }
  func.func @transform_1(%arg0: i32, %arg1: i32) -> (i32, i32) {
    %c0_i32 = arith.constant 0 : i32
    %c0_i32_0 = arith.constant 0 : i32
    %c0_i32_1 = arith.constant 0 : i32
    return %c0_i32, %c0_i32_0 : i32, i32
  }
  func.func @transform_2(%arg0: i32, %arg1: i32) -> (i32, i32) {
    %c0_i32 = arith.constant 0 : i32
    %c0_i32_0 = arith.constant 0 : i32
    %c0_i32_1 = arith.constant 0 : i32
    return %c0_i32, %c0_i32_0 : i32, i32
  }
  func.func @transform_3(%arg0: i32, %arg1: i32) -> (i32, i32) {
    %c0_i32 = arith.constant 0 : i32
    %c0_i32_0 = arith.constant 0 : i32
    return %arg1, %c0_i32 : i32, i32
  }
  func.func @transform_4(%arg0: i32, %arg1: i32) -> (i32, i32) {
    %c0_i32 = arith.constant 0 : i32
    return %arg0, %arg1 : i32, i32
  }
}

</mosaic_0001>

<bundles_post_ra>
// kernel: text_decoder_forward.19
= control target key start
LH: loop header
LB: loop body
LE: loop exit
PB: predicated region body
PF: predicated region fallthrough
CT: control target
= control target key end

     0   :  { %vm23_vm0 = vcmask 261120   ;;  %v181_v15 = vmov 0.0   ;;  %vm182_vm1 = vmmov 0   ;;  %vm145_vm2 = vcmask 781312   ;;  %s245_s0 = inlined_call_operand.vmem [shape: f32[16,32], index: 0, kind: input, shape index: {}]   ;;  %s246_s3 = inlined_call_operand.vmem [shape: bf16[32,96], index: 3, kind: input, shape index: {}]   ;;  %s247_s1 = inlined_call_operand.vmem [shape: f32[1,32], index: 1, kind: input, shape index: {}]   ;;  %s248_s2 = inlined_call_operand.vmem [shape: f32[1,32], index: 2, kind: input, shape index: {}]   ;;  %s249_s4 = inlined_call_operand.vmem [shape: f32[1,96], index: 4, kind: input, shape index: {}]   ;;  %s250_s5 = inlined_call_operand.vmem [shape: bf16[16,96], index: 5, kind: output, shape index: {}]  }
   0x1   :  { %v21_v0 = vld [vmem:[%s245_s0] sm:$0xff]  ;;  %v22_v1 = vld [vmem:[%s245_s0 + $0x8] sm:$0xff]  ;;  %165 = vmatprep.subr.bf16.mxu0 %v181_v15  ;;  %169 = vmatprep.mubr.msk.bf16.mxu0 %vm182_vm1, %v181_v15 }
   0x2   :  { %v24_v2 = vsel %vm23_vm0, %v21_v0, 0.0  ;;  %v27_v3 = vsel %vm23_vm0, %v22_v1, 0.0  ;;  %v175_v14 = vld [vmem:[%s246_s3] sm:$0xff]   ;;  %v176_v16 = vld [vmem:[%s246_s3 + $0x8] sm:$0xff]  }
   0x3   :  { %25 = vadd.xlane.f32.xlu0 %v24_v2  ;;  %166 = vmatpush3.bf16.msra.mxu0 %v175_v14  ;;  %v152_v25 = vld [vmem:[%s247_s1] ss:$0 sm:$0xff] }
   0x4   :  { %167 = vmatprep.subr.bf16.mxu0 %v181_v15  ;;  %v153_v29 = vld [vmem:[%s248_s2] ss:$0 sm:$0xff] }
   0x5   :  { %v154_v34 = vld [vmem:[%s249_s4] ss:$0 sm:$0xff] }
   0x7   :  { %28 = vadd.xlane.f32.xlu0 %v27_v3  ;;  %168 = vmatpush3.bf16.msra.mxu0 %v176_v16 }
  0x90   :  { %v26_v4 = vpop.xlane.xlu0 %25 }
  0x91   :  { %v31_v5 = vmul.f32 0.03125, %v26_v4 }
  0x93   :  { %v33_v6 = vsub.f32 %v21_v0, %v31_v5 }
  0x94   :  { %v29_v7 = vpop.xlane.xlu0 %28 }
  0x95   :  { %v32_v8 = vmul.f32 0.03125, %v29_v7  ;;  %v35_v9 = vmul.f32 %v33_v6, %v33_v6 }
  0x97   :  { %v34_v10 = vsub.f32 %v22_v1, %v32_v8  ;;  %v37_v11 = vsel %vm23_vm0, %v35_v9, 0.0 }
  0x98   :  { %38 = vadd.xlane.f32.xlu1 %v37_v11 }
  0x99   :  { %v36_v12 = vmul.f32 %v34_v10, %v34_v10 }
  0x9b   :  { %v40_v13 = vsel %vm23_vm0, %v36_v12, 0.0 }
  0x9c   :  { %41 = vadd.xlane.f32.xlu1 %v40_v13 }
 0x125   :  { %v39_v17 = vpop.xlane.xlu1 %38 }
 0x126   :  { %v43_v18 = vmul.f32 0.03125, %v39_v17 }
 0x128   :  { %v45_v19 = vadd.f32 1e-05, %v43_v18 }
 0x129   :  { %v42_v20 = vpop.xlane.xlu1 %41 }
 0x12a   :  { %177 = vrsqrt.f32 %v45_v19  ;;  %v44_v21 = vmul.f32 0.03125, %v42_v20 }
 0x12c   :  { %v46_v22 = vadd.f32 1e-05, %v44_v21 }
 0x12e   :  { %179 = vrsqrt.f32 %v46_v22 }
 0x134   :  { %v178_v23 = vpop.eup %177 }
 0x135   :  { %v49_v24 = vmul.f32 %v178_v23, %v33_v6 }
 0x137   :  { %v58_v28 = vmul.f32 %v152_v25, %v49_v24 }
 0x138   :  { %v180_v26 = vpop.eup %179 }
 0x139   :  { %v50_v27 = vmul.f32 %v180_v26, %v34_v10  ;;  %v67_v31 = vadd.f32 %v153_v29, %v58_v28 }
 0x13b   :  { %v59_v30 = vmul.f32 %v152_v25, %v50_v27 }
 0x13d   :  { %v68_v32 = vadd.f32 %v153_v29, %v59_v30 }
 0x13f   :  { %v69_v33 = vpack.c.bf16 %v68_v32, %v67_v31 }
 0x141   :  { %170 = vmatmul.mubr.msk.bf16.vlgmr.msra.gmra.mrb[0].mxu0 %vm23_vm0, %v69_v33 }
 0x214   :  { %v130_v35 = vpop.f32.mrb[0].mxu0 }
 0x215   :  { %v131_v36 = vadd.f32 %v154_v34, %v130_v35  ;;  %v171_v37 = vpop.f32.mrb[1].mxu0 }
 0x216   :  { %v133_v38 = vpop.f32.mrb[2].mxu0 }
 0x217   :  { %v160_v39 = vpack.c.bf16 %v131_v36, %v131_v36  ;;  %v134_v40 = vadd.f32 %v154_v34, %v133_v38  ;;  %v172_v41 = vpop.f32.mrb[3].mxu0 }
 0x219   :  { %146 = vst.msk [vmem:[%s250_s5] sm:$0xf] %vm145_vm2, %v160_v39  ;;  %v161_v42 = vpack.c.bf16 %v134_v40, %v134_v40 }
 0x21b   :  { %147 = vst.msk [vmem:[%s250_s5 + $0x4] sm:$0xf] %vm145_vm2, %v161_v42 }

// kernel: text_decoder_forward.21
= control target key start
LH: loop header
LB: loop body
LE: loop exit
PB: predicated region body
PF: predicated region fallthrough
CT: control target
= control target key end

     0   :  { %vm22_vm0 = vcmask 261120   ;;  %v144_v0 = vmov 0.0   ;;  %vm145_vm1 = vmmov 0   ;;  %s202_s1 = inlined_call_operand.vmem [shape: bf16[32,32], index: 1, kind: input, shape index: {}]   ;;  %s203_s0 = inlined_call_operand.vmem [shape: bf16[16,32], index: 0, kind: input, shape index: {}]   ;;  %s204_s2 = inlined_call_operand.vmem [shape: f32[1,32], index: 2, kind: input, shape index: {}]   ;;  %s205_s3 = inlined_call_operand.vmem [shape: f32[16,32], index: 3, kind: input, shape index: {}]   ;;  %s206_s4 = inlined_call_operand.vmem [shape: f32[16,32], index: 4, kind: output, shape index: {}]  }
   0x1   :  { %131 = vmatprep.subr.bf16.mxu0 %v144_v0  ;;  %v141_v1 = vld [vmem:[%s202_s1] sm:$0xff]   ;;  %135 = vmatprep.mubr.msk.bf16.mxu0 %vm145_vm1, %v144_v0  ;;  %23 = vst.msk [vmem:[#allocation2] sm:$0xff] %vm22_vm0, %v144_v0  ;;  %24 = vst.msk [vmem:[#allocation2 + $0x8] sm:$0xff] %vm22_vm0, %v144_v0  ;;  %v142_v2 = vld [vmem:[%s202_s1 + $0x8] sm:$0xff]  }
   0x2   :  { %132 = vmatpush3.bf16.msra.mxu0 %v141_v1  ;;  %v143_v3 = vld [vmem:[%s203_s0] sm:$0xff]   ;;  %v114_v17 = vld [vmem:[%s205_s3 + $0x8] sm:$0xff] }
   0x3   :  { %133 = vmatprep.subr.bf16.mxu0 %v144_v0  ;;  %v127_v12 = vld [vmem:[%s204_s2] ss:$0 sm:$0xff] }
   0x4   :  { %v113_v14 = vld [vmem:[%s205_s3] sm:$0xff] }
   0x6   :  { %134 = vmatpush3.bf16.msra.mxu0 %v142_v2 }
   0x8   :  { %v25_v4 = vld [vmem:[#allocation2] sm:$0xff]  ;;  %v26_v6 = vld [vmem:[#allocation2 + $0x8] sm:$0xff] }
   0x9   :  { %136 = vmatmul.mubr.msk.bf16.vlgmr.msra.gmra.mrb[0].mxu0 %vm22_vm0, %v143_v3 }
  0xdc   :  { %v88_v5 = vpop.f32.mrb[0].mxu0 }
  0xdd   :  { %v95_v7 = vadd.f32 %v88_v5, %v25_v4  ;;  %v137_v8 = vpop.f32.mrb[1].mxu0 }
  0xde   :  { %v91_v9 = vpop.f32.mrb[2].mxu0 }
  0xdf   :  { %97 = vst.msk [vmem:[#allocation2] sm:$0xff] %vm22_vm0, %v95_v7  ;;  %v96_v10 = vadd.f32 %v91_v9, %v26_v6  ;;  %v138_v11 = vpop.f32.mrb[3].mxu0 }
  0xe1   :  { %98 = vst.msk [vmem:[#allocation2 + $0x8] sm:$0xff] %vm22_vm0, %v96_v10 }
  0xe6   :  { %v102_v13 = vld [vmem:[#allocation2] sm:$0xff] }
  0xe7   :  { %v111_v15 = vadd.f32 %v127_v12, %v102_v13 }
  0xe8   :  { %v103_v16 = vld [vmem:[#allocation2 + $0x8] sm:$0xff] }
  0xe9   :  { %v115_v18 = vadd.f32 %v113_v14, %v111_v15  ;;  %v112_v19 = vadd.f32 %v127_v12, %v103_v16 }
  0xeb   :  { %117 = vst.msk [vmem:[%s206_s4] sm:$0xff] %vm22_vm0, %v115_v18  ;;  %v116_v20 = vadd.f32 %v114_v17, %v112_v19 }
  0xed   :  { %118 = vst.msk [vmem:[%s206_s4 + $0x8] sm:$0xff] %vm22_vm0, %v116_v20 }

// kernel: text_decoder_forward.22
= control target key start
LH: loop header
LB: loop body
LE: loop exit
PB: predicated region body
PF: predicated region fallthrough
CT: control target
= control target key end

     0   :  { %vm23_vm0 = vcmask 261120   ;;  %v181_v15 = vmov 0.0   ;;  %vm182_vm1 = vmmov 0   ;;  %vm145_vm2 = vcmask 257024   ;;  %s245_s0 = inlined_call_operand.vmem [shape: f32[16,32], index: 0, kind: input, shape index: {}]   ;;  %s246_s3 = inlined_call_operand.vmem [shape: bf16[32,32], index: 3, kind: input, shape index: {}]   ;;  %s247_s1 = inlined_call_operand.vmem [shape: f32[1,32], index: 1, kind: input, shape index: {}]   ;;  %s248_s2 = inlined_call_operand.vmem [shape: f32[1,32], index: 2, kind: input, shape index: {}]   ;;  %s249_s4 = inlined_call_operand.vmem [shape: f32[1,32], index: 4, kind: input, shape index: {}]   ;;  %s250_s5 = inlined_call_operand.vmem [shape: bf16[16,32], index: 5, kind: output, shape index: {}]  }
   0x1   :  { %v21_v0 = vld [vmem:[%s245_s0] sm:$0xff]  ;;  %v22_v1 = vld [vmem:[%s245_s0 + $0x8] sm:$0xff]  ;;  %165 = vmatprep.subr.bf16.mxu0 %v181_v15  ;;  %169 = vmatprep.mubr.msk.bf16.mxu0 %vm182_vm1, %v181_v15 }
   0x2   :  { %v24_v2 = vsel %vm23_vm0, %v21_v0, 0.0  ;;  %v27_v3 = vsel %vm23_vm0, %v22_v1, 0.0  ;;  %v175_v14 = vld [vmem:[%s246_s3] sm:$0xff]   ;;  %v176_v16 = vld [vmem:[%s246_s3 + $0x8] sm:$0xff]  }
   0x3   :  { %25 = vadd.xlane.f32.xlu0 %v24_v2  ;;  %166 = vmatpush3.bf16.msra.mxu0 %v175_v14  ;;  %v152_v25 = vld [vmem:[%s247_s1] ss:$0 sm:$0xff] }
   0x4   :  { %167 = vmatprep.subr.bf16.mxu0 %v181_v15  ;;  %v153_v29 = vld [vmem:[%s248_s2] ss:$0 sm:$0xff] }
   0x5   :  { %v154_v34 = vld [vmem:[%s249_s4] ss:$0 sm:$0xff] }
   0x7   :  { %28 = vadd.xlane.f32.xlu0 %v27_v3  ;;  %168 = vmatpush3.bf16.msra.mxu0 %v176_v16 }
  0x90   :  { %v26_v4 = vpop.xlane.xlu0 %25 }
  0x91   :  { %v31_v5 = vmul.f32 0.03125, %v26_v4 }
  0x93   :  { %v33_v6 = vsub.f32 %v21_v0, %v31_v5 }
  0x94   :  { %v29_v7 = vpop.xlane.xlu0 %28 }
  0x95   :  { %v32_v8 = vmul.f32 0.03125, %v29_v7  ;;  %v35_v9 = vmul.f32 %v33_v6, %v33_v6 }
  0x97   :  { %v34_v10 = vsub.f32 %v22_v1, %v32_v8  ;;  %v37_v11 = vsel %vm23_vm0, %v35_v9, 0.0 }
  0x98   :  { %38 = vadd.xlane.f32.xlu1 %v37_v11 }
  0x99   :  { %v36_v12 = vmul.f32 %v34_v10, %v34_v10 }
  0x9b   :  { %v40_v13 = vsel %vm23_vm0, %v36_v12, 0.0 }
  0x9c   :  { %41 = vadd.xlane.f32.xlu1 %v40_v13 }
 0x125   :  { %v39_v17 = vpop.xlane.xlu1 %38 }
 0x126   :  { %v43_v18 = vmul.f32 0.03125, %v39_v17 }
 0x128   :  { %v45_v19 = vadd.f32 1e-05, %v43_v18 }
 0x129   :  { %v42_v20 = vpop.xlane.xlu1 %41 }
 0x12a   :  { %177 = vrsqrt.f32 %v45_v19  ;;  %v44_v21 = vmul.f32 0.03125, %v42_v20 }
 0x12c   :  { %v46_v22 = vadd.f32 1e-05, %v44_v21 }
 0x12e   :  { %179 = vrsqrt.f32 %v46_v22 }
 0x134   :  { %v178_v23 = vpop.eup %177 }
 0x135   :  { %v49_v24 = vmul.f32 %v178_v23, %v33_v6 }
 0x137   :  { %v58_v28 = vmul.f32 %v152_v25, %v49_v24 }
 0x138   :  { %v180_v26 = vpop.eup %179 }
 0x139   :  { %v50_v27 = vmul.f32 %v180_v26, %v34_v10  ;;  %v67_v31 = vadd.f32 %v153_v29, %v58_v28 }
 0x13b   :  { %v59_v30 = vmul.f32 %v152_v25, %v50_v27 }
 0x13d   :  { %v68_v32 = vadd.f32 %v153_v29, %v59_v30 }
 0x13f   :  { %v69_v33 = vpack.c.bf16 %v68_v32, %v67_v31 }
 0x141   :  { %170 = vmatmul.mubr.msk.bf16.vlgmr.msra.gmra.mrb[0].mxu0 %vm23_vm0, %v69_v33 }
 0x214   :  { %v130_v35 = vpop.f32.mrb[0].mxu0 }
 0x215   :  { %v131_v36 = vadd.f32 %v154_v34, %v130_v35  ;;  %v171_v37 = vpop.f32.mrb[1].mxu0 }
 0x216   :  { %v133_v38 = vpop.f32.mrb[2].mxu0 }
 0x217   :  { %v160_v39 = vpack.c.bf16 %v131_v36, %v131_v36  ;;  %v134_v40 = vadd.f32 %v154_v34, %v133_v38  ;;  %v172_v41 = vpop.f32.mrb[3].mxu0 }
 0x219   :  { %146 = vst.msk [vmem:[%s250_s5] sm:$0xf] %vm145_vm2, %v160_v39  ;;  %v161_v42 = vpack.c.bf16 %v134_v40, %v134_v40 }
 0x21b   :  { %147 = vst.msk [vmem:[%s250_s5 + $0x4] sm:$0xf] %vm145_vm2, %v161_v42 }

// kernel: text_decoder_forward.20
= control target key start
LH: loop header
LB: loop body
LE: loop exit
PB: predicated region body
PF: predicated region fallthrough
CT: control target
= control target key end

     0   :  { %s1037_s12 = smov 0   ;;  %s1039_s13 = smov 0   ;;  %s1134_s0 = inlined_call_operand.vmem [shape: bf16[2,4,8,8], index: 0, kind: input, shape index: {}]   ;;  %s1135_s1 = inlined_call_operand.vmem [shape: bf16[2,4,8,8], index: 1, kind: input, shape index: {}]   ;;  %s1136_s2 = inlined_call_operand.vmem [shape: bf16[2,4,8,8], index: 2, kind: input, shape index: {}]   ;;  %s1137_s3 = inlined_call_operand.vmem [shape: bf16[2,4,8,8], index: 3, kind: output, shape index: {}]  }
   0x1   :  { %s1041_s14 = smov 0  }
   0x2 LB: > { %s25_s15 = sadd.s32 1, %s1009_s13  ;;  %p862_p0 = scmp.ge.s32.totalorder %s1013_s14, 1  ;;  %s1013_s14 = sphi %s1041_s14, %s13_s14   ;;  %s1009_s13 = sphi %s1039_s13, %s1139_s13   ;;  %s1005_s12 = sphi %s1037_s12, %s1138_s12  }
   0x3   : > { %p27_p1 = scmp.ge.s32.totalorder %s25_s15, 2  ;;  %p192_p2 = scmp.lt.s32.totalorder %s1013_s14, 3 }
   0x5   : > { %s1141_s15 = smov (%p27_p1, %s25_s15), 0  ;;  %p193_p3 = pnand %p862_p0, %p192_p2 }
   0x6   : > { %p243_p4 = scmp.lt.s32.totalorder (!%p193_p3), %s1005_s12, 1  ;;  %v1015_v0 = vmov (!%p193_p3), 0.0   ;;  %vm1016_vm0 = vmmov (!%p193_p3), 0   ;;  %vm295_vm1 = vcmask (!%p193_p3), 64512   ;;  %v484_v13 = vlaneseq (!%p193_p3) }
   0x7   : > { %196 = sbr.rel (%p193_p3) target bundleno = 784 (0x310), region = 32  ;;  %901 = vmatprep.subr.bf16.mxu0 (!%p193_p3), %v1015_v0  ;;  %907 = vmatprep.subr.bf16.mxu1 (!%p193_p3), %v1015_v0  ;;  %vm544_vm3 = vcmask (!%p193_p3), 1043456   ;;  %vm730_vm4 = vcmask (!%p193_p3), 60416  }
   0x8   : > { %903 = vmatprep.mubr.msk.bf16.mxu0 (!%p193_p3), %vm1016_vm0, %v1015_v0  ;;  %909 = vmatprep.mubr.msk.bf16.mxu1 (!%p193_p3), %vm1016_vm0, %v1015_v0  ;;  %v485_v14 = vshrl.u32 (!%p193_p3), %v484_v13, 7  ;;  %v487_v15 = vand.u32 (!%p193_p3), 127, %v484_v13 }
   0xa   : > { %vm488_vm2 = vcmp.gt.s32.totalorder (!%p193_p3), %v487_v15, %v485_v14 }
   0xe   : > { %s1143_s12 = smov (!%p243_p4, %s1005_s12), 1 }
   0xf   : > { %s1061_s16 = sshll.u32 %s1143_s12, 4 }
  0x10   : > { %s260_s19 = scalar_lea.vmem %s1135_s1, %s1061_s16  ;;  %s250_s22 = scalar_lea.vmem %s1134_s0, %s1061_s16 }
  0x11   : > { %v287_v1 = vld [vmem:[%s260_s19] sm:$0xf]  ;;  %v288_v2 = vld [vmem:[%s260_s19 + $0x4] sm:$0xf]  ;;  %v289_v5 = vld [vmem:[%s260_s19 + $0x8] sm:$0xf]  ;;  %s270_s25 = scalar_lea.vmem %s1136_s2, %s1061_s16  ;;  %s280_s28 = scalar_lea.vmem %s1137_s3, %s1061_s16 }
  0x12   : > { %v300_v3 = vsel %vm295_vm1, %v287_v1, 0  ;;  %v346_v4 = vsel %vm295_vm1, %v288_v2, 0  ;;  %v290_v6 = vld [vmem:[%s260_s19 + $0xc] sm:$0xf]  ;;  %v283_v7 = vld [vmem:[%s250_s22] sm:$0xf] }
  0x13   : > { %902 = vmatpush3.bf16.xpose.msra.mxu0 %v300_v3  ;;  %908 = vmatpush3.bf16.xpose.msra.mxu1 %v346_v4  ;;  %v284_v8 = vld [vmem:[%s250_s22 + $0x4] sm:$0xf]  ;;  %v392_v9 = vsel %vm295_vm1, %v289_v5, 0  ;;  %v438_v10 = vsel %vm295_vm1, %v290_v6, 0  ;;  %v285_v11 = vld [vmem:[%s250_s22 + $0x8] sm:$0xf] }
  0x14   : > { %913 = vmatprep.subr.bf16.mxu0 %v1015_v0  ;;  %919 = vmatprep.subr.bf16.mxu1 %v1015_v0  ;;  %v286_v12 = vld [vmem:[%s250_s22 + $0xc] sm:$0xf]  ;;  %v291_v1 = vld [vmem:[%s270_s25] sm:$0xf]  ;;  %v292_v3 = vld [vmem:[%s270_s25 + $0x4] sm:$0xf] }
  0x15   : > { %v546_v2 = vsel %vm544_vm3, %v291_v1, 0  ;;  %v592_v4 = vsel %vm544_vm3, %v292_v3, 0  ;;  %v293_v5 = vld [vmem:[%s270_s25 + $0x8] sm:$0xf] }
  0x16   : > { %v638_v6 = vsel %vm544_vm3, %v293_v5, 0 }
  0x1a   : > { %904 = vmatmul.mubr.msk.bf16.vlgmr.msra.gmra.mrb[0].mxu0 %vm295_vm1, %v283_v7  ;;  %910 = vmatmul.mubr.msk.bf16.vlgmr.msra.gmra.mrb[0].mxu1 %vm295_vm1, %v284_v8  ;;  %v294_v7 = vld [vmem:[%s270_s25 + $0xc] sm:$0xf] }
  0x1b   : > { %914 = vmatpush3.bf16.xpose.msra.mxu0 %v392_v9  ;;  %920 = vmatpush3.bf16.xpose.msra.mxu1 %v438_v10  ;;  %v684_v8 = vsel %vm544_vm3, %v294_v7, 0 }
  0x1c   : > { %915 = vmatprep.mubr.msk.bf16.mxu0 %vm1016_vm0, %v1015_v0  ;;  %921 = vmatprep.mubr.msk.bf16.mxu1 %vm1016_vm0, %v1015_v0 }
  0x1d   : > { %925 = vmatprep.subr.bf16.mxu0 %v1015_v0  ;;  %931 = vmatprep.subr.bf16.mxu1 %v1015_v0 }
  0x22   : > { %916 = vmatmul.mubr.msk.bf16.vlgmr.msra.gmra.mrb[4].mxu0 %vm295_vm1, %v285_v11  ;;  %922 = vmatmul.mubr.msk.bf16.vlgmr.msra.gmra.mrb[4].mxu1 %vm295_vm1, %v286_v12 }
  0x23   : > { %927 = vmatprep.mubr.msk.bf16.mxu0 %vm1016_vm0, %v1015_v0  ;;  %933 = vmatprep.mubr.msk.bf16.mxu1 %vm1016_vm0, %v1015_v0 }
  0x24   : > { %926 = vmatpush3.bf16.msra.mxu0 %v546_v2  ;;  %932 = vmatpush3.bf16.msra.mxu1 %v592_v4 }
  0x25   : > { %937 = vmatprep.subr.bf16.mxu0 %v1015_v0  ;;  %943 = vmatprep.subr.bf16.mxu1 %v1015_v0 }
  0xed   : > { %v336_v16 = vpop.f32.mrb[0].mxu0  ;;  %v382_v17 = vpop.f32.mrb[0].mxu1 }
  0xee   : > { %v480_v18 = vmul.f32 0.35355338, %v336_v16  ;;  %v905_v19 = vpop.f32.mrb[1].mxu0  ;;  %v481_v20 = vmul.f32 0.35355338, %v382_v17  ;;  %v911_v21 = vpop.f32.mrb[1].mxu1 }
  0xef   : > { %v339_v22 = vpop.f32.mrb[2].mxu0  ;;  %v385_v23 = vpop.f32.mrb[2].mxu1 }
  0xf0   : > { %v906_v24 = vpop.f32.mrb[3].mxu0  ;;  %v912_v25 = vpop.f32.mrb[3].mxu1  ;;  %v489_v26 = vsel %vm488_vm2, -inf, %v480_v18  ;;  %v490_v27 = vsel %vm488_vm2, -inf, %v481_v20 }
  0xf1   : > { %v493_v28 = vsel %vm295_vm1, %v489_v26, -inf  ;;  %v496_v29 = vsel %vm295_vm1, %v490_v27, -inf }
  0xf2   : > { %494 = vmax.xlane.f32.xlu0 %v493_v28 }
  0xf5   : > { %v428_v30 = vpop.f32.mrb[4].mxu0  ;;  %v474_v31 = vpop.f32.mrb[4].mxu1 }
  0xf6   : > { %v482_v32 = vmul.f32 0.35355338, %v428_v30  ;;  %497 = vmax.xlane.f32.xlu0 %v496_v29  ;;  %v917_v33 = vpop.f32.mrb[5].mxu0  ;;  %v483_v34 = vmul.f32 0.35355338, %v474_v31  ;;  %v923_v35 = vpop.f32.mrb[5].mxu1 }
  0xf7   : > { %v431_v36 = vpop.f32.mrb[6].mxu0  ;;  %v477_v37 = vpop.f32.mrb[6].mxu1 }
  0xf8   : > { %v918_v38 = vpop.f32.mrb[7].mxu0  ;;  %v924_v39 = vpop.f32.mrb[7].mxu1  ;;  %v491_v40 = vsel %vm488_vm2, -inf, %v482_v32  ;;  %v492_v41 = vsel %vm488_vm2, -inf, %v483_v34 }
  0xf9   : > { %v499_v42 = vsel %vm295_vm1, %v491_v40, -inf  ;;  %v502_v43 = vsel %vm295_vm1, %v492_v41, -inf }
  0xfa   : > { %500 = vmax.xlane.f32.xlu1 %v499_v42 }
  0xfe   : > { %503 = vmax.xlane.f32.xlu1 %v502_v43 }
 0x17f   : > { %v495_v44 = vpop.xlane.xlu0 %494 }
 0x180   : > { %v505_v45 = vsub.f32 %v489_v26, %v495_v44 }
 0x182   : > { %v509_v46 = vmul.f32 1.442695, %v505_v45 }
 0x183   : > { %v498_v47 = vpop.xlane.xlu0 %497 }
 0x184   : > { %975 = vpow2.f32 %v509_v46  ;;  %v506_v48 = vsub.f32 %v490_v27, %v498_v47 }
 0x186   : > { %v511_v49 = vmul.f32 1.442695, %v506_v48 }
 0x187   : > { %v501_v50 = vpop.xlane.xlu1 %500 }
 0x188   : > { %977 = vpow2.f32 %v511_v49  ;;  %v507_v51 = vsub.f32 %v491_v40, %v501_v50 }
 0x18a   : > { %v513_v52 = vmul.f32 1.442695, %v507_v51 }
 0x18b   : > { %v504_v53 = vpop.xlane.xlu1 %503 }
 0x18c   : > { %979 = vpow2.f32 %v513_v52  ;;  %v508_v54 = vsub.f32 %v492_v41, %v504_v53 }
 0x18e   : > { %v976_v55 = vpop.eup %975  ;;  %v515_v56 = vmul.f32 1.442695, %v508_v54 }
 0x18f   : > { %v517_v57 = vsel %vm295_vm1, %v976_v55, 0.0 }
 0x190   : > { %981 = vpow2.f32 %v515_v56  ;;  %518 = vadd.xlane.f32.xlu0 %v517_v57 }
 0x192   : > { %v978_v58 = vpop.eup %977 }
 0x193   : > { %v520_v59 = vsel %vm295_vm1, %v978_v58, 0.0 }
 0x194   : > { %521 = vadd.xlane.f32.xlu1 %v520_v59 }
 0x196   : > { %v980_v60 = vpop.eup %979 }
 0x197   : > { %v523_v61 = vsel %vm295_vm1, %v980_v60, 0.0 }
 0x198   : > { %524 = vadd.xlane.f32.xlu0 %v523_v61 }
 0x19a   : > { %v982_v62 = vpop.eup %981 }
 0x19b   : > { %v526_v63 = vsel %vm295_vm1, %v982_v62, 0.0 }
 0x19c   : > { %527 = vadd.xlane.f32.xlu1 %v526_v63 }
 0x21d   : > { %v519_v9 = vpop.xlane.xlu0 %518 }
 0x21e   : > { %983 = vrcp.f32 %v519_v9 }
 0x221   : > { %v522_v10 = vpop.xlane.xlu1 %521 }
 0x222   : > { %985 = vrcp.f32 %v522_v10 }
 0x225   : > { %v525_v11 = vpop.xlane.xlu0 %524 }
 0x226   : > { %987 = vrcp.f32 %v525_v11 }
 0x228   : > { %v984_v12 = vpop.eup %983 }
 0x229   : > { %v533_v13 = vmul.f32 %v984_v12, %v976_v55  ;;  %v528_v14 = vpop.xlane.xlu1 %527 }
 0x22a   : > { %989 = vrcp.f32 %v528_v14 }
 0x22b   : > { %v537_v15 = vpack.c.bf16 %v533_v13, %v533_v13 }
 0x22c   : > { %v986_v16 = vpop.eup %985 }
 0x22d   : > { %v534_v17 = vmul.f32 %v986_v16, %v978_v58  ;;  %928 = vmatmul.mubr.msk.bf16.vlgmr.msra.gmra.mrb[8].mxu0 %vm295_vm1, %v537_v15 }
 0x22e   : > { %938 = vmatpush3.bf16.msra.mxu0 %v638_v6  ;;  %939 = vmatprep.mubr.msk.bf16.mxu0 %vm1016_vm0, %v1015_v0 }
 0x22f   : > { %v538_v18 = vpack.c.bf16 %v534_v17, %v534_v17 }
 0x230   : > { %v988_v19 = vpop.eup %987 }
 0x231   : > { %v535_v20 = vmul.f32 %v988_v19, %v980_v60  ;;  %934 = vmatmul.mubr.msk.bf16.vlgmr.msra.gmra.mrb[8].mxu1 %vm295_vm1, %v538_v18 }
 0x232   : > { %944 = vmatpush3.bf16.msra.mxu1 %v684_v8  ;;  %945 = vmatprep.mubr.msk.bf16.mxu1 %vm1016_vm0, %v1015_v0 }
 0x233   : > { %v539_v21 = vpack.c.bf16 %v535_v20, %v535_v20 }
 0x234   : > { %v990_v22 = vpop.eup %989 }
 0x235   : > { %v536_v23 = vmul.f32 %v990_v22, %v982_v62  ;;  %940 = vmatmul.mubr.msk.bf16.vlgmr.msra.gmra.mrb[12].mxu0 %vm295_vm1, %v539_v21 }
 0x237   : > { %v540_v24 = vpack.c.bf16 %v536_v23, %v536_v23 }
 0x239   : > { %946 = vmatmul.mubr.msk.bf16.vlgmr.msra.gmra.mrb[12].mxu1 %vm295_vm1, %v540_v24 }
 0x300   : > { %v582_v25 = vpop.f32.mrb[8].mxu0 }
 0x301   : > { %v726_v26 = vpack.c.bf16 %v582_v25, %v582_v25  ;;  %v929_v27 = vpop.f32.mrb[9].mxu0 }
 0x302   : > { %v585_v28 = vpop.f32.mrb[10].mxu0 }
 0x303   : > { %731 = vst.msk [vmem:[%s280_s28] sm:$0xf] %vm730_vm4, %v726_v26  ;;  %v930_v0 = vpop.f32.mrb[11].mxu0 }
 0x304   : > { %v628_v29 = vpop.f32.mrb[8].mxu1 }
 0x305   : > { %v727_v30 = vpack.c.bf16 %v628_v29, %v628_v29  ;;  %v935_v31 = vpop.f32.mrb[9].mxu1 }
 0x306   : > { %v631_v32 = vpop.f32.mrb[10].mxu1 }
 0x307   : > { %732 = vst.msk [vmem:[%s280_s28 + $0x4] sm:$0xf] %vm730_vm4, %v727_v30  ;;  %v936_v33 = vpop.f32.mrb[11].mxu1 }
 0x308   : > { %v674_v34 = vpop.f32.mrb[12].mxu0 }
 0x309   : > { %v728_v35 = vpack.c.bf16 %v674_v34, %v674_v34  ;;  %v941_v36 = vpop.f32.mrb[13].mxu0 }
 0x30a   : > { %v677_v37 = vpop.f32.mrb[14].mxu0 }
 0x30b   : > { %733 = vst.msk [vmem:[%s280_s28 + $0x8] sm:$0xf] %vm730_vm4, %v728_v35  ;;  %v942_v38 = vpop.f32.mrb[15].mxu0 }
 0x30c   : > { %v720_v39 = vpop.f32.mrb[12].mxu1 }
 0x30d   : > { %v729_v40 = vpack.c.bf16 %v720_v39, %v720_v39  ;;  %v947_v41 = vpop.f32.mrb[13].mxu1 }
 0x30e   : > { %v723_v42 = vpop.f32.mrb[14].mxu1 }
 0x30f   : > { %734 = vst.msk [vmem:[%s280_s28 + $0xc] sm:$0xf] %vm730_vm4, %v729_v40  ;;  %v948_v43 = vpop.f32.mrb[15].mxu1 }
 0x310 PF: > { %s13_s14 = sadd.s32 1, %s1013_s14   ;;  %s1138_s12 = smov %s1009_s13 }
 0x311   : > { %p10_p5 = scmp.ge.s32.totalorder %s13_s14, 4   ;;  %s1139_s13 = smov %s1141_s15 }
 0x313   :  { %12 = sbr.rel (!%p10_p5) target bundleno = 2 (0x2), region = 68 }

// kernel: text_decoder_forward.23
= control target key start
LH: loop header
LB: loop body
LE: loop exit
PB: predicated region body
PF: predicated region fallthrough
CT: control target
= control target key end

     0   :  { %vm19_vm0 = vcmask 523264   ;;  %v198_v1 = vmov 0.0   ;;  %vm58_vm1 = vcmask 261120   ;;  %vm157_vm2 = vcmask 519168   ;;  %s254_s1 = inlined_call_operand.vmem [shape: bf16[32,64], index: 1, kind: input, shape index: {}]   ;;  %s255_s0 = inlined_call_operand.vmem [shape: bf16[32,32], index: 0, kind: input, shape index: {}]   ;;  %s256_s2 = inlined_call_operand.vmem [shape: f32[1,64], index: 2, kind: input, shape index: {}]   ;;  %s257_s3 = inlined_call_operand.vmem [shape: bf16[32,64], index: 3, kind: output, shape index: {}]  }
   0x1   :  { %v194_v0 = vld [vmem:[%s254_s1] sm:$0xff]   ;;  %22 = vst.msk [vmem:[#allocation2 + $0x10] sm:$0xff] %vm19_vm0, %v198_v1  ;;  %20 = vst.msk [vmem:[#allocation2] sm:$0xff] %vm19_vm0, %v198_v1  ;;  %v195_v2 = vld [vmem:[%s254_s1 + $0x8] sm:$0xff]  }
   0x2   :  { %21 = vst.msk [vmem:[#allocation2 + $0x8] sm:$0xff] %vm19_vm0, %v198_v1  ;;  %23 = vst.msk [vmem:[#allocation2 + $0x18] sm:$0xff] %vm19_vm0, %v198_v1  ;;  %185 = vmatprep.subr.bf16.mxu0 %v194_v0  ;;  %v196_v3 = vld [vmem:[%s255_s0] sm:$0xff]   ;;  %v197_v4 = vld [vmem:[%s255_s0 + $0x8] sm:$0xff]  }
   0x3   :  { %186 = vmatpush3.bf16.msra.mxu0 %v194_v0  ;;  %189 = vmatprep.mubr.msk.bf16.mxu0 %vm58_vm1, %v196_v3  ;;  %v172_v17 = vld [vmem:[%s256_s2] ss:$0 sm:$0xff] }
   0x4   :  { %187 = vmatprep.subr.bf16.mxu0 %v195_v2 }
   0x7   :  { %188 = vmatpush3.bf16.msra.mxu0 %v195_v2 }
   0x8   :  { %v26_v5 = vld [vmem:[#allocation2 + $0x10] sm:$0xff]  ;;  %v24_v6 = vld [vmem:[#allocation2] sm:$0xff] }
   0x9   :  { %v27_v8 = vld [vmem:[#allocation2 + $0x18] sm:$0xff]  ;;  %v25_v11 = vld [vmem:[#allocation2 + $0x8] sm:$0xff] }
   0xa   :  { %190 = vmatmul.mubr.msk.bf16.vlgmr.msra.gmra.mrb[0].mxu0 %vm58_vm1, %v197_v4 }
  0xdd   :  { %v191_v7 = vpop.f32.mrb[0].mxu0 }
  0xde   :  { %v116_v9 = vadd.f32 %v191_v7, %v26_v5  ;;  %v99_v10 = vpop.f32.mrb[1].mxu0 }
  0xdf   :  { %v114_v12 = vadd.f32 %v99_v10, %v24_v6  ;;  %v192_v13 = vpop.f32.mrb[2].mxu0 }
  0xe0   :  { %121 = vst.msk [vmem:[#allocation2 + $0x10] sm:$0xff] %vm19_vm0, %v116_v9  ;;  %v117_v14 = vadd.f32 %v192_v13, %v27_v8  ;;  %v102_v15 = vpop.f32.mrb[3].mxu0 }
  0xe1   :  { %119 = vst.msk [vmem:[#allocation2] sm:$0xff] %vm19_vm0, %v114_v12  ;;  %v115_v16 = vadd.f32 %v102_v15, %v25_v11 }
  0xe2   :  { %122 = vst.msk [vmem:[#allocation2 + $0x18] sm:$0xff] %vm19_vm0, %v117_v14 }
  0xe3   :  { %120 = vst.msk [vmem:[#allocation2 + $0x8] sm:$0xff] %vm19_vm0, %v115_v16 }
  0xe7   :  { %v128_v18 = vld [vmem:[#allocation2 + $0x10] sm:$0xff] }
  0xe8   :  { %v139_v19 = vadd.f32 %v172_v17, %v128_v18  ;;  %v126_v20 = vld [vmem:[#allocation2] sm:$0xff] }
  0xe9   :  { %v137_v21 = vadd.f32 %v172_v17, %v126_v20  ;;  %v129_v22 = vld [vmem:[#allocation2 + $0x18] sm:$0xff] }
  0xea   :  { %v179_v23 = vpack.c.bf16 %v139_v19, %v139_v19  ;;  %v140_v24 = vadd.f32 %v172_v17, %v129_v22  ;;  %v127_v25 = vld [vmem:[#allocation2 + $0x8] sm:$0xff] }
  0xeb   :  { %v177_v26 = vpack.c.bf16 %v137_v21, %v137_v21  ;;  %v138_v27 = vadd.f32 %v172_v17, %v127_v25 }
  0xec   :  { %160 = vst.msk [vmem:[%s257_s3 + $0x8] sm:$0xf] %vm157_vm2, %v179_v23  ;;  %v180_v28 = vpack.c.bf16 %v140_v24, %v140_v24 }
  0xed   :  { %158 = vst.msk [vmem:[%s257_s3] sm:$0xf] %vm157_vm2, %v177_v26  ;;  %v178_v29 = vpack.c.bf16 %v138_v27, %v138_v27 }
  0xee   :  { %161 = vst.msk [vmem:[%s257_s3 + $0xc] sm:$0xf] %vm157_vm2, %v180_v28 }
  0xef   :  { %159 = vst.msk [vmem:[%s257_s3 + $0x4] sm:$0xf] %vm157_vm2, %v178_v29 }

// kernel: text_decoder_forward.26
= control target key start
LH: loop header
LB: loop body
LE: loop exit
PB: predicated region body
PF: predicated region fallthrough
CT: control target
= control target key end

     0   :  { %vm23_vm0 = vcmask 261120   ;;  %v168_v15 = vmov 0.0   ;;  %vm169_vm1 = vmmov 0   ;;  %s232_s0 = inlined_call_operand.vmem [shape: f32[16,32], index: 0, kind: input, shape index: {}]   ;;  %s233_s3 = inlined_call_operand.vmem [shape: bf16[32,128], index: 3, kind: input, shape index: {}]   ;;  %s234_s1 = inlined_call_operand.vmem [shape: f32[1,32], index: 1, kind: input, shape index: {}]   ;;  %s235_s2 = inlined_call_operand.vmem [shape: f32[1,32], index: 2, kind: input, shape index: {}]   ;;  %s236_s4 = inlined_call_operand.vmem [shape: f32[1,128], index: 4, kind: input, shape index: {}]   ;;  %s237_s5 = inlined_call_operand.vmem [shape: f32[16,128], index: 5, kind: output, shape index: {}]  }
   0x1   :  { %v21_v0 = vld [vmem:[%s232_s0] sm:$0xff]  ;;  %v22_v1 = vld [vmem:[%s232_s0 + $0x8] sm:$0xff]  ;;  %152 = vmatprep.subr.bf16.mxu0 %v168_v15  ;;  %156 = vmatprep.mubr.msk.bf16.mxu0 %vm169_vm1, %v168_v15 }
   0x2   :  { %v24_v2 = vsel %vm23_vm0, %v21_v0, 0.0  ;;  %v27_v3 = vsel %vm23_vm0, %v22_v1, 0.0  ;;  %v162_v14 = vld [vmem:[%s233_s3] sm:$0xff]   ;;  %v163_v16 = vld [vmem:[%s233_s3 + $0x8] sm:$0xff]  }
   0x3   :  { %25 = vadd.xlane.f32.xlu0 %v24_v2  ;;  %153 = vmatpush3.bf16.msra.mxu0 %v162_v14  ;;  %v143_v25 = vld [vmem:[%s234_s1] ss:$0 sm:$0xff] }
   0x4   :  { %154 = vmatprep.subr.bf16.mxu0 %v168_v15  ;;  %v144_v29 = vld [vmem:[%s235_s2] ss:$0 sm:$0xff] }
   0x5   :  { %v145_v34 = vld [vmem:[%s236_s4] ss:$0 sm:$0xff] }
   0x7   :  { %28 = vadd.xlane.f32.xlu0 %v27_v3  ;;  %155 = vmatpush3.bf16.msra.mxu0 %v163_v16 }
  0x90   :  { %v26_v4 = vpop.xlane.xlu0 %25 }
  0x91   :  { %v31_v5 = vmul.f32 0.03125, %v26_v4 }
  0x93   :  { %v33_v6 = vsub.f32 %v21_v0, %v31_v5 }
  0x94   :  { %v29_v7 = vpop.xlane.xlu0 %28 }
  0x95   :  { %v32_v8 = vmul.f32 0.03125, %v29_v7  ;;  %v35_v9 = vmul.f32 %v33_v6, %v33_v6 }
  0x97   :  { %v34_v10 = vsub.f32 %v22_v1, %v32_v8  ;;  %v37_v11 = vsel %vm23_vm0, %v35_v9, 0.0 }
  0x98   :  { %38 = vadd.xlane.f32.xlu1 %v37_v11 }
  0x99   :  { %v36_v12 = vmul.f32 %v34_v10, %v34_v10 }
  0x9b   :  { %v40_v13 = vsel %vm23_vm0, %v36_v12, 0.0 }
  0x9c   :  { %41 = vadd.xlane.f32.xlu1 %v40_v13 }
 0x125   :  { %v39_v17 = vpop.xlane.xlu1 %38 }
 0x126   :  { %v43_v18 = vmul.f32 0.03125, %v39_v17 }
 0x128   :  { %v45_v19 = vadd.f32 1e-05, %v43_v18 }
 0x129   :  { %v42_v20 = vpop.xlane.xlu1 %41 }
 0x12a   :  { %164 = vrsqrt.f32 %v45_v19  ;;  %v44_v21 = vmul.f32 0.03125, %v42_v20 }
 0x12c   :  { %v46_v22 = vadd.f32 1e-05, %v44_v21 }
 0x12e   :  { %166 = vrsqrt.f32 %v46_v22 }
 0x134   :  { %v165_v23 = vpop.eup %164 }
 0x135   :  { %v49_v24 = vmul.f32 %v165_v23, %v33_v6 }
 0x137   :  { %v58_v28 = vmul.f32 %v143_v25, %v49_v24 }
 0x138   :  { %v167_v26 = vpop.eup %166 }
 0x139   :  { %v50_v27 = vmul.f32 %v167_v26, %v34_v10  ;;  %v67_v31 = vadd.f32 %v144_v29, %v58_v28 }
 0x13b   :  { %v59_v30 = vmul.f32 %v143_v25, %v50_v27 }
 0x13d   :  { %v68_v32 = vadd.f32 %v144_v29, %v59_v30 }
 0x13f   :  { %v69_v33 = vpack.c.bf16 %v68_v32, %v67_v31 }
 0x141   :  { %157 = vmatmul.mubr.msk.bf16.vlgmr.msra.gmra.mrb[0].mxu0 %vm23_vm0, %v69_v33 }
 0x214   :  { %v130_v35 = vpop.f32.mrb[0].mxu0 }
 0x215   :  { %v131_v36 = vadd.f32 %v145_v34, %v130_v35  ;;  %v158_v37 = vpop.f32.mrb[1].mxu0 }
 0x216   :  { %v133_v38 = vpop.f32.mrb[2].mxu0 }
 0x217   :  { %137 = vst [vmem:[%s237_s5] sm:$0xff] %v131_v36  ;;  %v134_v39 = vadd.f32 %v145_v34, %v133_v38  ;;  %v159_v40 = vpop.f32.mrb[3].mxu0 }
 0x219   :  { %138 = vst [vmem:[%s237_s5 + $0x8] sm:$0xff] %v134_v39 }

// kernel: text_decoder_forward.24
= control target key start
LH: loop header
LB: loop body
LE: loop exit
PB: predicated region body
PF: predicated region fallthrough
CT: control target
= control target key end

     0   :  { %s1096_s12 = smov 0   ;;  %s1098_s13 = smov 0   ;;  %s1197_s0 = inlined_call_operand.vmem [shape: bf16[2,4,8,8], index: 0, kind: input, shape index: {}]   ;;  %s1198_s1 = inlined_call_operand.vmem [shape: bf16[2,4,16,8], index: 1, kind: input, shape index: {}]   ;;  %s1199_s2 = inlined_call_operand.vmem [shape: bf16[2,4,16,8], index: 2, kind: input, shape index: {}]   ;;  %s1200_s3 = inlined_call_operand.vmem [shape: bf16[2,4,8,8], index: 3, kind: output, shape index: {}]  }
   0x1   :  { %s1100_s14 = smov 0  }
   0x2 LB: > { %s25_s15 = sadd.s32 1, %s1068_s13  ;;  %p905_p0 = scmp.ge.s32.totalorder %s1072_s14, 1  ;;  %s1072_s14 = sphi %s1100_s14, %s13_s14   ;;  %s1068_s13 = sphi %s1098_s13, %s1202_s13   ;;  %s1064_s12 = sphi %s1096_s12, %s1201_s12  }
   0x3   : > { %p27_p1 = scmp.ge.s32.totalorder %s25_s15, 2  ;;  %p194_p2 = scmp.lt.s32.totalorder %s1072_s14, 3 }
   0x5   : > { %s1204_s15 = smov (%p27_p1, %s25_s15), 0  ;;  %p195_p3 = pnand %p905_p0, %p194_p2 }
   0x6   : > { %p247_p4 = scmp.lt.s32.totalorder (!%p195_p3), %s1064_s12, 1  ;;  %v1074_v0 = vmov (!%p195_p3), 0.0   ;;  %vm1075_vm0 = vmmov (!%p195_p3), 0   ;;  %vm314_vm1 = vcmask (!%p195_p3), 64512   ;;  %vm518_vm2 = vcmask (!%p195_p3), 130048  }
   0x7   : > { %198 = sbr.rel (%p195_p3) target bundleno = 783 (0x30f), region = 32  ;;  %952 = vmatprep.subr.bf16.mxu0 (!%p195_p3), %v1074_v0  ;;  %958 = vmatprep.subr.bf16.mxu1 (!%p195_p3), %v1074_v0  ;;  %vm767_vm3 = vcmask (!%p195_p3), 60416  }
   0x8   : > { %954 = vmatprep.mubr.msk.bf16.mxu0 (!%p195_p3), %vm1075_vm0, %v1074_v0  ;;  %960 = vmatprep.mubr.msk.bf16.mxu1 (!%p195_p3), %vm1075_vm0, %v1074_v0 }
   0xe   : > { %s1206_s12 = smov (!%p247_p4, %s1064_s12), 1 }
   0xf   : > { %s933_s16 = sshll.u32 %s1206_s12, 5  ;;  %s932_s20 = sshll.u32 %s1206_s12, 4 }
  0x10   : > { %s265_s19 = scalar_lea.vmem %s1198_s1, %s933_s16  ;;  %s254_s23 = scalar_lea.vmem %s1197_s0, %s932_s20 }
  0x11   : > { %v1026_v1 = vld [vmem:[%s265_s19] sm:$0xff]   ;;  %v1027_v2 = vld [vmem:[%s265_s19 + $0x8] sm:$0xff]   ;;  %v1028_v5 = vld [vmem:[%s265_s19 + $0x10] sm:$0xff]   ;;  %s1138_s26 = scalar_lea.vmem %s1199_s2, %s933_s16  ;;  %s286_s29 = scalar_lea.vmem %s1200_s3, %s932_s20 }
  0x12   : > { %v319_v3 = vsel %vm314_vm1, %v1026_v1, 0  ;;  %v370_v4 = vsel %vm314_vm1, %v1027_v2, 0  ;;  %v289_v6 = vld [vmem:[%s254_s23] sm:$0xf]  ;;  %v1029_v7 = vld [vmem:[%s265_s19 + $0x18] sm:$0xff]   ;;  %v421_v9 = vsel %vm314_vm1, %v1028_v5, 0 }
  0x13   : > { %953 = vmatpush3.bf16.xpose.msra.mxu0 %v319_v3  ;;  %959 = vmatpush3.bf16.xpose.msra.mxu1 %v370_v4  ;;  %v290_v8 = vld [vmem:[%s254_s23 + $0x4] sm:$0xf]  ;;  %v472_v10 = vsel %vm314_vm1, %v1029_v7, 0  ;;  %v291_v11 = vld [vmem:[%s254_s23 + $0x8] sm:$0xf]  ;;  %v1032_v2 = vld [vmem:[%s1138_s26 + $0x10] sm:$0xff]  }
  0x14   : > { %964 = vmatprep.subr.bf16.mxu0 %v1074_v0  ;;  %970 = vmatprep.subr.bf16.mxu1 %v1074_v0  ;;  %v292_v12 = vld [vmem:[%s254_s23 + $0xc] sm:$0xf]  ;;  %v1030_v57 = vld [vmem:[%s1138_s26] sm:$0xff]  }
  0x15   : > { %v1031_v58 = vld [vmem:[%s1138_s26 + $0x8] sm:$0xff]  }
  0x1a   : > { %955 = vmatmul.mubr.msk.bf16.vlgmr.msra.gmra.mrb[0].mxu0 %vm314_vm1, %v289_v6  ;;  %961 = vmatmul.mubr.msk.bf16.vlgmr.msra.gmra.mrb[0].mxu1 %vm314_vm1, %v290_v8  ;;  %v1033_v6 = vld [vmem:[%s1138_s26 + $0x18] sm:$0xff]  }
  0x1b   : > { %965 = vmatpush3.bf16.xpose.msra.mxu0 %v421_v9  ;;  %971 = vmatpush3.bf16.xpose.msra.mxu1 %v472_v10 }
  0x1c   : > { %966 = vmatprep.mubr.msk.bf16.mxu0 %vm1075_vm0, %v1074_v0  ;;  %972 = vmatprep.mubr.msk.bf16.mxu1 %vm1075_vm0, %v1074_v0 }
  0x1d   : > { %976 = vmatprep.subr.bf16.mxu0 %v1074_v0  ;;  %982 = vmatprep.subr.bf16.mxu1 %v1074_v0 }
  0x22   : > { %967 = vmatmul.mubr.msk.bf16.vlgmr.msra.gmra.mrb[4].mxu0 %vm314_vm1, %v291_v11  ;;  %973 = vmatmul.mubr.msk.bf16.vlgmr.msra.gmra.mrb[4].mxu1 %vm314_vm1, %v292_v12 }
  0x23   : > { %978 = vmatprep.mubr.msk.bf16.mxu0 %vm1075_vm0, %v1074_v0  ;;  %984 = vmatprep.mubr.msk.bf16.mxu1 %vm1075_vm0, %v1074_v0 }
  0x24   : > { %977 = vmatpush3.bf16.msra.mxu0 %v1030_v57  ;;  %983 = vmatpush3.bf16.msra.mxu1 %v1031_v58 }
  0x25   : > { %988 = vmatprep.subr.bf16.mxu0 %v1074_v0  ;;  %994 = vmatprep.subr.bf16.mxu1 %v1074_v0 }
  0xed   : > { %v355_v13 = vpop.f32.mrb[0].mxu0  ;;  %v406_v16 = vpop.f32.mrb[0].mxu1 }
  0xee   : > { %v514_v14 = vmul.f32 0.35355338, %v355_v13  ;;  %v956_v15 = vpop.f32.mrb[1].mxu0  ;;  %v515_v18 = vmul.f32 0.35355338, %v406_v16  ;;  %v962_v19 = vpop.f32.mrb[1].mxu1 }
  0xef   : > { %v358_v17 = vpop.f32.mrb[2].mxu0  ;;  %v409_v21 = vpop.f32.mrb[2].mxu1 }
  0xf0   : > { %v957_v20 = vpop.f32.mrb[3].mxu0  ;;  %v519_v22 = vsel %vm518_vm2, %v514_v14, -inf  ;;  %v963_v23 = vpop.f32.mrb[3].mxu1  ;;  %v522_v24 = vsel %vm518_vm2, %v515_v18, -inf }
  0xf1   : > { %520 = vmax.xlane.f32.xlu0 %v519_v22 }
  0xf5   : > { %523 = vmax.xlane.f32.xlu0 %v522_v24  ;;  %v457_v25 = vpop.f32.mrb[4].mxu0  ;;  %v508_v28 = vpop.f32.mrb[4].mxu1 }
  0xf6   : > { %v516_v26 = vmul.f32 0.35355338, %v457_v25  ;;  %v968_v27 = vpop.f32.mrb[5].mxu0  ;;  %v517_v30 = vmul.f32 0.35355338, %v508_v28  ;;  %v974_v31 = vpop.f32.mrb[5].mxu1 }
  0xf7   : > { %v460_v29 = vpop.f32.mrb[6].mxu0  ;;  %v511_v33 = vpop.f32.mrb[6].mxu1 }
  0xf8   : > { %v969_v32 = vpop.f32.mrb[7].mxu0  ;;  %v525_v34 = vsel %vm518_vm2, %v516_v26, -inf  ;;  %v975_v35 = vpop.f32.mrb[7].mxu1  ;;  %v528_v36 = vsel %vm518_vm2, %v517_v30, -inf }
  0xf9   : > { %526 = vmax.xlane.f32.xlu1 %v525_v34 }
  0xfd   : > { %529 = vmax.xlane.f32.xlu1 %v528_v36 }
 0x17e   : > { %v521_v37 = vpop.xlane.xlu0 %520 }
 0x17f   : > { %v531_v38 = vsub.f32 %v514_v14, %v521_v37 }
 0x181   : > { %v535_v39 = vmul.f32 1.442695, %v531_v38 }
 0x182   : > { %v524_v40 = vpop.xlane.xlu0 %523 }
 0x183   : > { %1034 = vpow2.f32 %v535_v39  ;;  %v532_v41 = vsub.f32 %v515_v18, %v524_v40 }
 0x185   : > { %v537_v42 = vmul.f32 1.442695, %v532_v41 }
 0x186   : > { %v527_v43 = vpop.xlane.xlu1 %526 }
 0x187   : > { %1036 = vpow2.f32 %v537_v42  ;;  %v533_v44 = vsub.f32 %v516_v26, %v527_v43 }
 0x189   : > { %v539_v45 = vmul.f32 1.442695, %v533_v44 }
 0x18a   : > { %v530_v46 = vpop.xlane.xlu1 %529 }
 0x18b   : > { %1038 = vpow2.f32 %v539_v45  ;;  %v534_v47 = vsub.f32 %v517_v30, %v530_v46 }
 0x18d   : > { %v1035_v48 = vpop.eup %1034  ;;  %v541_v49 = vmul.f32 1.442695, %v534_v47 }
 0x18e   : > { %v543_v50 = vsel %vm518_vm2, %v1035_v48, 0.0 }
 0x18f   : > { %1040 = vpow2.f32 %v541_v49  ;;  %544 = vadd.xlane.f32.xlu0 %v543_v50 }
 0x191   : > { %v1037_v51 = vpop.eup %1036 }
 0x192   : > { %v546_v52 = vsel %vm518_vm2, %v1037_v51, 0.0 }
 0x193   : > { %547 = vadd.xlane.f32.xlu1 %v546_v52 }
 0x195   : > { %v1039_v53 = vpop.eup %1038 }
 0x196   : > { %v549_v54 = vsel %vm518_vm2, %v1039_v53, 0.0 }
 0x197   : > { %550 = vadd.xlane.f32.xlu0 %v549_v54 }
 0x199   : > { %v1041_v55 = vpop.eup %1040 }
 0x19a   : > { %v552_v56 = vsel %vm518_vm2, %v1041_v55, 0.0 }
 0x19b   : > { %553 = vadd.xlane.f32.xlu1 %v552_v56 }
 0x21c   : > { %v545_v59 = vpop.xlane.xlu0 %544 }
 0x21d   : > { %1042 = vrcp.f32 %v545_v59 }
 0x220   : > { %v548_v60 = vpop.xlane.xlu1 %547 }
 0x221   : > { %1044 = vrcp.f32 %v548_v60 }
 0x224   : > { %v551_v61 = vpop.xlane.xlu0 %550 }
 0x225   : > { %1046 = vrcp.f32 %v551_v61 }
 0x227   : > { %v1043_v62 = vpop.eup %1042 }
 0x228   : > { %v559_v63 = vmul.f32 %v1043_v62, %v1035_v48  ;;  %v554_v1 = vpop.xlane.xlu1 %553 }
 0x229   : > { %1048 = vrcp.f32 %v554_v1 }
 0x22a   : > { %v563_v3 = vpack.c.bf16 %v559_v63, %v559_v63 }
 0x22b   : > { %v1045_v4 = vpop.eup %1044 }
 0x22c   : > { %v560_v5 = vmul.f32 %v1045_v4, %v1037_v51  ;;  %979 = vmatmul.mubr.msk.bf16.vlgmr.msra.gmra.mrb[8].mxu0 %vm518_vm2, %v563_v3 }
 0x22d   : > { %989 = vmatpush3.bf16.msra.mxu0 %v1032_v2  ;;  %990 = vmatprep.mubr.msk.bf16.mxu0 %vm1075_vm0, %v1074_v0 }
 0x22e   : > { %v564_v7 = vpack.c.bf16 %v560_v5, %v560_v5 }
 0x22f   : > { %v1047_v8 = vpop.eup %1046 }
 0x230   : > { %v561_v9 = vmul.f32 %v1047_v8, %v1039_v53  ;;  %985 = vmatmul.mubr.msk.bf16.vlgmr.msra.gmra.mrb[8].mxu1 %vm518_vm2, %v564_v7 }
 0x231   : > { %995 = vmatpush3.bf16.msra.mxu1 %v1033_v6  ;;  %996 = vmatprep.mubr.msk.bf16.mxu1 %vm1075_vm0, %v1074_v0 }
 0x232   : > { %v565_v10 = vpack.c.bf16 %v561_v9, %v561_v9 }
 0x233   : > { %v1049_v11 = vpop.eup %1048 }
 0x234   : > { %v562_v12 = vmul.f32 %v1049_v11, %v1041_v55  ;;  %991 = vmatmul.mubr.msk.bf16.vlgmr.msra.gmra.mrb[12].mxu0 %vm518_vm2, %v565_v10 }
 0x236   : > { %v566_v13 = vpack.c.bf16 %v562_v12, %v562_v12 }
 0x238   : > { %997 = vmatmul.mubr.msk.bf16.vlgmr.msra.gmra.mrb[12].mxu1 %vm518_vm2, %v566_v13 }
 0x2ff   : > { %v610_v14 = vpop.f32.mrb[8].mxu0 }
 0x300   : > { %v763_v15 = vpack.c.bf16 %v610_v14, %v610_v14  ;;  %v980_v16 = vpop.f32.mrb[9].mxu0 }
 0x301   : > { %v613_v17 = vpop.f32.mrb[10].mxu0 }
 0x302   : > { %768 = vst.msk [vmem:[%s286_s29] sm:$0xf] %vm767_vm3, %v763_v15  ;;  %v981_v0 = vpop.f32.mrb[11].mxu0 }
 0x303   : > { %v659_v18 = vpop.f32.mrb[8].mxu1 }
 0x304   : > { %v764_v19 = vpack.c.bf16 %v659_v18, %v659_v18  ;;  %v986_v20 = vpop.f32.mrb[9].mxu1 }
 0x305   : > { %v662_v21 = vpop.f32.mrb[10].mxu1 }
 0x306   : > { %769 = vst.msk [vmem:[%s286_s29 + $0x4] sm:$0xf] %vm767_vm3, %v764_v19  ;;  %v987_v22 = vpop.f32.mrb[11].mxu1 }
 0x307   : > { %v708_v23 = vpop.f32.mrb[12].mxu0 }
 0x308   : > { %v765_v24 = vpack.c.bf16 %v708_v23, %v708_v23  ;;  %v992_v25 = vpop.f32.mrb[13].mxu0 }
 0x309   : > { %v711_v26 = vpop.f32.mrb[14].mxu0 }
 0x30a   : > { %770 = vst.msk [vmem:[%s286_s29 + $0x8] sm:$0xf] %vm767_vm3, %v765_v24  ;;  %v993_v27 = vpop.f32.mrb[15].mxu0 }
 0x30b   : > { %v757_v28 = vpop.f32.mrb[12].mxu1 }
 0x30c   : > { %v766_v29 = vpack.c.bf16 %v757_v28, %v757_v28  ;;  %v998_v30 = vpop.f32.mrb[13].mxu1 }
 0x30d   : > { %v760_v31 = vpop.f32.mrb[14].mxu1 }
 0x30e   : > { %771 = vst.msk [vmem:[%s286_s29 + $0xc] sm:$0xf] %vm767_vm3, %v766_v29  ;;  %v999_v32 = vpop.f32.mrb[15].mxu1 }
 0x30f PF: > { %s13_s14 = sadd.s32 1, %s1072_s14   ;;  %s1201_s12 = smov %s1068_s13 }
 0x310   : > { %p10_p5 = scmp.ge.s32.totalorder %s13_s14, 4   ;;  %s1202_s13 = smov %s1204_s15 }
 0x312   :  { %12 = sbr.rel (!%p10_p5) target bundleno = 2 (0x2), region = 68 }

// kernel: text_decoder_forward.27
= control target key start
LH: loop header
LB: loop body
LE: loop exit
PB: predicated region body
PF: predicated region fallthrough
CT: control target
= control target key end

     0   :  { %vm22_vm0 = vcmask 261120   ;;  %v219_v0 = vmov 0.0   ;;  %vm220_vm1 = vmmov 0   ;;  %s294_s1 = inlined_call_operand.vmem [shape: bf16[128,32], index: 1, kind: input, shape index: {}]   ;;  %s295_s0 = inlined_call_operand.vmem [shape: bf16[16,128], index: 0, kind: input, shape index: {}]   ;;  %s296_s2 = inlined_call_operand.vmem [shape: f32[1,32], index: 2, kind: input, shape index: {}]   ;;  %s297_s3 = inlined_call_operand.vmem [shape: f32[16,32], index: 3, kind: input, shape index: {}]   ;;  %s298_s4 = inlined_call_operand.vmem [shape: f32[16,32], index: 4, kind: output, shape index: {}]  }
   0x1   :  { %188 = vmatprep.subr.bf16.mxu0 %v219_v0  ;;  %v210_v1 = vld [vmem:[%s294_s1] sm:$0xff]   ;;  %204 = vmatprep.mubr.msk.bf16.mxu0 %vm220_vm1, %v219_v0  ;;  %23 = vst.msk [vmem:[#allocation2] sm:$0xff] %vm22_vm0, %v219_v0  ;;  %24 = vst.msk [vmem:[#allocation2 + $0x8] sm:$0xff] %vm22_vm0, %v219_v0  ;;  %v211_v2 = vld [vmem:[%s294_s1 + $0x8] sm:$0xff]  }
   0x2   :  { %189 = vmatpush3.bf16.msra.mxu0 %v210_v1  ;;  %v212_v3 = vld [vmem:[%s294_s1 + $0x10] sm:$0xff]   ;;  %v213_v4 = vld [vmem:[%s294_s1 + $0x18] sm:$0xff]   ;;  %v214_v5 = vld [vmem:[%s294_s1 + $0x20] sm:$0xff]  }
   0x3   :  { %190 = vmatprep.subr.bf16.mxu0 %v219_v0  ;;  %v215_v6 = vld [vmem:[%s294_s1 + $0x28] sm:$0xff]   ;;  %v216_v7 = vld [vmem:[%s294_s1 + $0x30] sm:$0xff]   ;;  %v217_v8 = vld [vmem:[%s294_s1 + $0x38] sm:$0xff]  }
   0x4   :  { %v218_v9 = vld [vmem:[%s295_s0] sm:$0xff]   ;;  %v160_v22 = vld [vmem:[%s297_s3 + $0x8] sm:$0xff] }
   0x5   :  { %v178_v18 = vld [vmem:[%s296_s2] ss:$0 sm:$0xff] }
   0x6   :  { %191 = vmatpush3.bf16.msra.mxu0 %v211_v2  ;;  %v159_v20 = vld [vmem:[%s297_s3] sm:$0xff] }
   0x7   :  { %192 = vmatprep.subr.bf16.mxu0 %v219_v0 }
   0x8   :  { %v25_v10 = vld [vmem:[#allocation2] sm:$0xff]  ;;  %v26_v12 = vld [vmem:[#allocation2 + $0x8] sm:$0xff] }
   0xa   :  { %193 = vmatpush3.bf16.msra.mxu0 %v212_v3 }
   0xb   :  { %194 = vmatprep.subr.bf16.mxu0 %v219_v0 }
   0xe   :  { %195 = vmatpush3.bf16.msra.mxu0 %v213_v4 }
   0xf   :  { %196 = vmatprep.subr.bf16.mxu0 %v219_v0 }
  0x12   :  { %197 = vmatpush3.bf16.msra.mxu0 %v214_v5 }
  0x13   :  { %198 = vmatprep.subr.bf16.mxu0 %v219_v0 }
  0x16   :  { %199 = vmatpush3.bf16.msra.mxu0 %v215_v6 }
  0x17   :  { %200 = vmatprep.subr.bf16.mxu0 %v219_v0 }
  0x1a   :  { %201 = vmatpush3.bf16.msra.mxu0 %v216_v7 }
  0x1b   :  { %202 = vmatprep.subr.bf16.mxu0 %v219_v0 }
  0x1e   :  { %203 = vmatpush3.bf16.msra.mxu0 %v217_v8 }
  0x21   :  { %205 = vmatmul.mubr.bf16.vlgmr.msra.gmra.mrb[0].mxu0 %v218_v9 }
  0xf4   :  { %v133_v11 = vpop.f32.mrb[0].mxu0 }
  0xf5   :  { %v140_v13 = vadd.f32 %v133_v11, %v25_v10  ;;  %v206_v14 = vpop.f32.mrb[1].mxu0 }
  0xf6   :  { %v136_v15 = vpop.f32.mrb[2].mxu0 }
  0xf7   :  { %143 = vst.msk [vmem:[#allocation2] sm:$0xff] %vm22_vm0, %v140_v13  ;;  %v141_v16 = vadd.f32 %v136_v15, %v26_v12  ;;  %v207_v17 = vpop.f32.mrb[3].mxu0 }
  0xf9   :  { %144 = vst.msk [vmem:[#allocation2 + $0x8] sm:$0xff] %vm22_vm0, %v141_v16 }
  0xfe   :  { %v148_v19 = vld [vmem:[#allocation2] sm:$0xff] }
  0xff   :  { %v157_v21 = vadd.f32 %v178_v18, %v148_v19 }
 0x100   :  { %v149_v23 = vld [vmem:[#allocation2 + $0x8] sm:$0xff] }
 0x101   :  { %v161_v24 = vadd.f32 %v159_v20, %v157_v21  ;;  %v158_v25 = vadd.f32 %v178_v18, %v149_v23 }
 0x103   :  { %163 = vst.msk [vmem:[%s298_s4] sm:$0xff] %vm22_vm0, %v161_v24  ;;  %v162_v26 = vadd.f32 %v160_v22, %v158_v25 }
 0x105   :  { %164 = vst.msk [vmem:[%s298_s4 + $0x8] sm:$0xff] %vm22_vm0, %v162_v26 }

// kernel: text_decoder_forward.37
= control target key start
LH: loop header
LB: loop body
LE: loop exit
PB: predicated region body
PF: predicated region fallthrough
CT: control target
= control target key end

     0   :  { %vm21_vm0 = vcmask 261120   ;;  %s382_s0 = inlined_call_operand.vmem [shape: f32[16,32], index: 0, kind: input, shape index: {}]   ;;  %s383_s1 = inlined_call_operand.vmem [shape: f32[1,32], index: 1, kind: input, shape index: {}]   ;;  %s384_s2 = inlined_call_operand.vmem [shape: f32[1,32], index: 2, kind: input, shape index: {}]   ;;  %s385_s3 = inlined_call_operand.vmem [shape: bf16[128,32], index: 3, kind: input, shape index: {}]   ;;  %s386_s4 = inlined_call_operand.hbm [shape: f32[16,128], index: 4, kind: output, shape index: {}]  }
   0x1   :  { %v19_v0 = vld [vmem:[%s382_s0] sm:$0xff]  ;;  %v20_v1 = vld [vmem:[%s382_s0 + $0x8] sm:$0xff] }
   0x2   :  { %v22_v2 = vsel %vm21_vm0, %v19_v0, 0.0  ;;  %v25_v3 = vsel %vm21_vm0, %v20_v1, 0.0 }
   0x3   :  { %23 = vadd.xlane.f32.xlu0 %v22_v2 }
   0x7   :  { %26 = vadd.xlane.f32.xlu0 %v25_v3 }
   0x8   :  { %9 = vsyncpa [#allocation3], 0  ;;  %v255_v4 = vld [vmem:[%s385_s3] sm:$0xff]   ;;  %v291_v5 = vmov 0.0   ;;  %v256_v7 = vld [vmem:[%s385_s3 + $0x8] sm:$0xff]   ;;  %vm292_vm1 = vmmov 0  }
   0x9   :  { %230 = vmatprep.subr.bf16.mxu0 %v291_v5  ;;  %v128_v6 = vsel %vm21_vm0, %v255_v4, 0  ;;  %v131_v8 = vsel %vm21_vm0, %v256_v7, 0  ;;  %v257_v9 = vld [vmem:[%s385_s3 + $0x10] sm:$0xff]   ;;  %v258_v11 = vld [vmem:[%s385_s3 + $0x18] sm:$0xff]   ;;  %v259_v13 = vld [vmem:[%s385_s3 + $0x20] sm:$0xff]   ;;  %246 = vmatprep.mubr.msk.bf16.mxu0 %vm292_vm1, %v291_v5  ;;  %s293_s11 = smov [#allocation2]  }
   0xa   :  { %231 = vmatpush3.bf16.xpose.msra.mxu0 %v128_v6  ;;  %v134_v10 = vsel %vm21_vm0, %v257_v9, 0  ;;  %v137_v12 = vsel %vm21_vm0, %v258_v11, 0  ;;  %v140_v14 = vsel %vm21_vm0, %v259_v13, 0  ;;  %v260_v25 = vld [vmem:[%s385_s3 + $0x28] sm:$0xff]   ;;  %v261_v27 = vld [vmem:[%s385_s3 + $0x30] sm:$0xff]   ;;  %v262_v29 = vld [vmem:[%s385_s3 + $0x38] sm:$0xff]  }
   0xb   :  { %232 = vmatprep.subr.bf16.mxu0 %v291_v5  ;;  %v143_v26 = vsel %vm21_vm0, %v260_v25, 0  ;;  %v146_v28 = vsel %vm21_vm0, %v261_v27, 0  ;;  %v149_v30 = vsel %vm21_vm0, %v262_v29, 0  ;;  %v210_v39 = vld [vmem:[%s383_s1] ss:$0 sm:$0xff]  ;;  %s199_s12 = sshll.u32 %s293_s11, 4  ;;  %s200_s12 = int_to_ptr.vmem [resolvable:$true] %s199_s12 }
   0xc   :  { %v211_v43 = vld [vmem:[%s384_s2] ss:$0 sm:$0xff]  ;;  %s267_s1 = scalar_lea.vmem %s200_s12, 256  ;;  %p272_p1 = scmp.lt.s32.totalorder %s200_s12, %s200_s12 }
   0xd   :  { %p268_p0 = scmp.ne.s32.totalorder %s200_s12, %s267_s1  ;;  %p273_p2 = scmp.lt.s32.totalorder %s267_s1, %s267_s1 }
   0xf   :  { %p274_p3 = por %p273_p2, %p272_p1 }
  0x11   :  { %p275_p4 = pnand %p274_p3, %p268_p0 }
  0x12   :  { %233 = vmatpush3.bf16.xpose.msra.mxu0 %v131_v8 }
  0x13   :  { %234 = vmatprep.subr.bf16.mxu0 %v291_v5 }
  0x1a   :  { %235 = vmatpush3.bf16.xpose.msra.mxu0 %v134_v10 }
  0x1b   :  { %236 = vmatprep.subr.bf16.mxu0 %v291_v5 }
  0x22   :  { %237 = vmatpush3.bf16.xpose.msra.mxu0 %v137_v12 }
  0x23   :  { %238 = vmatprep.subr.bf16.mxu0 %v291_v5 }
  0x2a   :  { %239 = vmatpush3.bf16.xpose.msra.mxu0 %v140_v14 }
  0x2b   :  { %240 = vmatprep.subr.bf16.mxu0 %v291_v5 }
  0x32   :  { %241 = vmatpush3.bf16.xpose.msra.mxu0 %v143_v26 }
  0x33   :  { %242 = vmatprep.subr.bf16.mxu0 %v291_v5 }
  0x3a   :  { %243 = vmatpush3.bf16.xpose.msra.mxu0 %v146_v28 }
  0x3b   :  { %244 = vmatprep.subr.bf16.mxu0 %v291_v5 }
  0x42   :  { %245 = vmatpush3.bf16.xpose.msra.mxu0 %v149_v30 }
  0x90   :  { %v24_v15 = vpop.xlane.xlu0 %23 }
  0x91   :  { %v29_v16 = vmul.f32 0.03125, %v24_v15 }
  0x93   :  { %v31_v17 = vsub.f32 %v19_v0, %v29_v16 }
  0x94   :  { %v27_v18 = vpop.xlane.xlu0 %26 }
  0x95   :  { %v30_v19 = vmul.f32 0.03125, %v27_v18  ;;  %v33_v20 = vmul.f32 %v31_v17, %v31_v17 }
  0x97   :  { %v32_v21 = vsub.f32 %v20_v1, %v30_v19  ;;  %v35_v22 = vsel %vm21_vm0, %v33_v20, 0.0 }
  0x98   :  { %36 = vadd.xlane.f32.xlu1 %v35_v22 }
  0x99   :  { %v34_v23 = vmul.f32 %v32_v21, %v32_v21 }
  0x9b   :  { %v38_v24 = vsel %vm21_vm0, %v34_v23, 0.0 }
  0x9c   :  { %39 = vadd.xlane.f32.xlu1 %v38_v24 }
 0x125   :  { %v37_v31 = vpop.xlane.xlu1 %36 }
 0x126   :  { %v41_v32 = vmul.f32 0.03125, %v37_v31 }
 0x128   :  { %v43_v33 = vadd.f32 1e-05, %v41_v32 }
 0x129   :  { %v40_v34 = vpop.xlane.xlu1 %39 }
 0x12a   :  { %263 = vrsqrt.f32 %v43_v33  ;;  %v42_v35 = vmul.f32 0.03125, %v40_v34 }
 0x12c   :  { %v44_v36 = vadd.f32 1e-05, %v42_v35 }
 0x12e   :  { %265 = vrsqrt.f32 %v44_v36 }
 0x134   :  { %v264_v37 = vpop.eup %263 }
 0x135   :  { %v47_v38 = vmul.f32 %v264_v37, %v31_v17 }
 0x137   :  { %v56_v42 = vmul.f32 %v210_v39, %v47_v38 }
 0x138   :  { %v266_v40 = vpop.eup %265 }
 0x139   :  { %v48_v41 = vmul.f32 %v266_v40, %v32_v21  ;;  %v65_v45 = vadd.f32 %v211_v43, %v56_v42 }
 0x13b   :  { %v57_v44 = vmul.f32 %v210_v39, %v48_v41 }
 0x13d   :  { %v66_v46 = vadd.f32 %v211_v43, %v57_v44 }
 0x13f   :  { %v67_v47 = vpack.c.bf16 %v66_v46, %v65_v45 }
 0x141   :  { %247 = vmatmul.mubr.msk.bf16.vlgmr.msra.gmra.mrb[0].mxu0 %vm21_vm0, %v67_v47 }
 0x214   :  { %v185_v48 = vpop.f32.mrb[0].mxu0 }
 0x215   :  { %192 = vst [vmem:[#allocation2] sm:$0xff] %v185_v48  ;;  %v248_v49 = vpop.f32.mrb[1].mxu0 }
 0x216   :  { %v188_v50 = vpop.f32.mrb[2].mxu0 }
 0x217   :  { %193 = vst [vmem:[#allocation2 + $0x8] sm:$0xff] %v188_v50  ;;  %v249_v51 = vpop.f32.mrb[3].mxu0 }
 0x218   :  { %278 = shalt.err (!%p275_p4)
}
 0x219   :  { %s279_s14 = scalar_lea.hbm %s386_s4, 256 }
 0x21a   :  { %p280_p5 = scmp.ne.s32.totalorder %s386_s4, %s279_s14  ;;  %p283_p6 = scmp.lt.u32.totalorder %s279_s14, %s386_s4 }
 0x21c   :  { %p285_p7 = pnand %p283_p6, %p280_p5 }
 0x21e   :  { %288 = shalt.err (!%p285_p7)
}
 0x21f   :  { %s294_s19 = smov 128   ;;  %s295_s20 = smov 8  }
 0x220   :  { %205 = dma.vmem_to_hbm [thread:$0]  %s200_s12, 256, %s386_s4, [#allocation3], %s294_s19, %s294_s19, %s295_s20  }
 0x221   :  { %289 = dma.done.wait [#allocation3], 256  }
 0x222   :  { %290 = vsyncadd [#allocation3], 4294967040 }
 0x223   :  { %209 = vsyncpa [#allocation3], 1 }

</bundles_post_ra>
